<compile_context>
chip_gen: v7x
topology: tpu7x:2x2x1
jax: 0.10.0
libtpu: 0.0.40
codegen_flags: <defaults>
</compile_context>

<pallas_src>
import functools

import jax
import jax.numpy as jnp
from jax.experimental import pallas as pl
from jax.experimental.pallas import tpu as pltpu

_GN_EPS = 1e-5
_INV_SQRT2 = 0.7071067811865476
# Abramowitz-Stegun 7.1.26 erf polynomial coefficients (max abs err ~1.5e-7).
_A1, _A2, _A3 = 0.254829592, -0.284496736, 1.421413741
_A4, _A5, _PP = -1.453152027, 1.061405429, 0.3275911


def _gelu(x):
    # nn.GELU() default == exact (erf-based) GELU.
    # TODO(synk): jax.lax.erf has no guaranteed Mosaic lowering, so keep the A&S
    # polynomial; its 1/(1+p|x|) goes through the EUP approximate reciprocal.
    u = x * _INV_SQRT2
    au = jnp.abs(u)
    sgn = jnp.where(u >= 0.0, 1.0, -1.0)
    t = pl.reciprocal(1.0 + _PP * au, approx=True)
    poly = ((((_A5 * t + _A4) * t + _A3) * t + _A2) * t + _A1) * t
    erf_u = sgn * (1.0 - poly * jnp.exp(-au * au))
    return 0.5 * x * (1.0 + erf_u)


def _down_kernel(xp_ref, w11_ref, g1_ref, b1_ref, w12_ref,
                 w21_ref, g2_ref, b2_ref, w22_ref, wd_ref, out_ref,
                 *, bt, seq_len, seg_len, pad_sep, stride, out_len, k_dc, k_dn):
    f32 = jnp.float32
    wl = bt * seg_len                                   # packed lane width

    # ---- per-step constants: data mask + per-sample segment matrices (iota) ----
    col = jax.lax.broadcasted_iota(jnp.int32, (1, wl), 1)
    data_mask = jnp.zeros((1, wl), f32)                 # 1 on data cols, 0 on pads
    for b in range(bt):                                 # static, bt is small
        lo = b * seg_len + pad_sep
        data_mask = data_mask + jnp.where(
            jnp.logical_and(col >= lo, col < lo + seq_len), 1.0, 0.0)

    r_w = jax.lax.broadcasted_iota(jnp.int32, (wl, bt), 0)
    c_b = jax.lax.broadcasted_iota(jnp.int32, (wl, bt), 1)
    seg_sum = jnp.where(jnp.logical_and(r_w >= c_b * seg_len,
                                        r_w < (c_b + 1) * seg_len), 1.0, 0.0)
    r_b = jax.lax.broadcasted_iota(jnp.int32, (bt, wl), 0)
    c_w = jax.lax.broadcasted_iota(jnp.int32, (bt, wl), 1)
    seg_bcast = jnp.where(jnp.logical_and(c_w >= r_b * seg_len,
                                          c_w < (r_b + 1) * seg_len), 1.0, 0.0)

    def conv_same(h, w2d, k_taps):
        # 'same' stride-1 conv on the packed layout: im2col buffer + ONE matmul
        # with contraction dim k_taps*C (fills the MXU systolic depth).
        cpad = (k_taps - 1) // 2
        hm = h * data_mask                              # zero the pad separators
        z = jnp.zeros((hm.shape[0], cpad), f32)
        hw = jnp.concatenate([z, hm, z], axis=1)        # (C, wl + 2*cpad)
        stacked = jnp.concatenate([hw[:, k:k + wl] for k in range(k_taps)],
                                  axis=0)               # (k_taps*C, wl)
        return jnp.dot(w2d, stacked, preferred_element_type=f32)   # (C_out, wl)

    def groupnorm(h, gamma, beta):
        # GroupNorm(1, C): per-sample stats over (C, L) data columns only.
        # One-pass (sum, sum of squares) masked segment reduction + fused affine.
        inv_n = 1.0 / float(h.shape[0] * seq_len)
        hm = h * data_mask
        s1 = jnp.dot(jnp.sum(hm, axis=0, keepdims=True), seg_sum,
                     preferred_element_type=f32)        # (1, bt)
        s2 = jnp.dot(jnp.sum(hm * hm, axis=0, keepdims=True), seg_sum,
                     preferred_element_type=f32)        # (1, bt)
        mu = s1 * inv_n
        var = s2 * inv_n - mu * mu
        rstd = jax.lax.rsqrt(var + _GN_EPS)
        mu_row = jnp.dot(mu, seg_bcast, preferred_element_type=f32)     # (1, wl)
        rstd_row = jnp.dot(rstd, seg_bcast, preferred_element_type=f32)  # (1, wl)
        return (h - mu_row) * rstd_row * gamma + beta

    h = xp_ref[0]                                       # (C_in, wl), pads are zero
    # DoubleConv #1: conv -> GroupNorm -> GELU -> conv -> GELU
    h = conv_same(h, w11_ref[...], k_dc)
    h = _gelu(groupnorm(h, g1_ref[...], b1_ref[...]))
    h = _gelu(conv_same(h, w12_ref[...], k_dc))
    # DoubleConv #2
    h = conv_same(h, w21_ref[...], k_dc)
    h = _gelu(groupnorm(h, g2_ref[...], b2_ref[...]))
    h = _gelu(conv_same(h, w22_ref[...], k_dc))

    # downdim conv: stride-1 'same' conv (one matmul), then per-sample strided
    # decimation in-kernel (strided_out[:, l] == stride1_out[:, stride*l]), so
    # only the strided output is ever written back to HBM.
    y = conv_same(h, wd_ref[...], k_dn)                 # (C_out, wl)
    rr = jax.lax.broadcasted_iota(jnp.int32, (seg_len, out_len), 0)
    cc = jax.lax.broadcasted_iota(jnp.int32, (seg_len, out_len), 1)
    dsel = jnp.where(rr == pad_sep + stride * cc, 1.0, 0.0)   # (seg_len, out_len)
    # TODO(synk): for very long L, replace the O(L*L_out) decimation matmul with
    # an L-tiled loop to bound MXU/VMEM cost of the selection matrix.
    for b in range(bt):
        yb = y[:, b * seg_len:(b + 1) * seg_len]        # (C_out, seg_len)
        out_ref[0, b] = jnp.dot(yb, dsel,
                                preferred_element_type=f32).astype(out_ref.dtype)


def _conv_w2d(w):
    """PyTorch Conv1d weight (C_out, C_in, K) -> im2col matrix (C_out, K*C_in)."""
    c_o, c_i, k = w.shape
    return jnp.transpose(w, (0, 2, 1)).reshape(c_o, k * c_i)


@functools.partial(jax.jit, static_argnames=("stridex", "block_b"))
def down_forward(x, t_embedding, params, stridex, block_b=None):
    B, c_in, L = x.shape
    c_out, _, k_dc = params["w11"].shape
    k_dn = params["wd"].shape[2]
    pad_dc = (k_dc - 1) // 2
    pad_dn = (k_dn - 1) // 2
    pad_sep = max(pad_dc, pad_dn)
    seg_len = L + 2 * pad_sep
    out_len = (L + 2 * pad_dn - k_dn) // stridex + 1    # PyTorch Conv1d length

    # Samples packed per grid step: largest divisor of B with a modest lane width
    # (amortizes the ~0.35us/step overhead and widens the matmul lane dim).
    if block_b is None:
        bt = 1
        for d in range(1, B + 1):
            if B % d == 0 and d * seg_len <= 1024:
                bt = d
    else:
        bt = block_b
    assert B % bt == 0
    g = B // bt
    wl = bt * seg_len

    # Fold emb_t (Linear(1, C_in)) into the input and pack Bt samples along the
    # lane axis with zero pad-separators of width pad_sep.
    t_col = (t_embedding.reshape(B, 1).astype(jnp.float32) @ params["wemb"].T
             + params["bemb"][None, :])                              # (B, C_in)
    xt = x.astype(jnp.float32) + t_col[:, :, None]                   # (B, C_in, L)
    xp = jnp.pad(xt, ((0, 0), (0, 0), (pad_sep, pad_sep)))           # (B,C_in,seg)
    xp = xp.reshape(g, bt, c_in, seg_len).transpose(0, 2, 1, 3).reshape(g, c_in, wl)

    # Lane-dense 2-D im2col weight matrices (C_out, K*C).
    w11 = _conv_w2d(params["w11"])
    w12 = _conv_w2d(params["w12"])
    w21 = _conv_w2d(params["w21"])
    w22 = _conv_w2d(params["w22"])
    wd = _conv_w2d(params["wd"])
    g1 = params["g1"][:, None]
    b1 = params["be1"][:, None]
    g2 = params["g2"][:, None]
    b2 = params["be2"][:, None]

    def full_spec(shape):
        return pl.BlockSpec(shape, lambda i, n=len(shape): (0,) * n)

    kernel = functools.partial(
        _down_kernel, bt=bt, seq_len=L, seg_len=seg_len, pad_sep=pad_sep,
        stride=stridex, out_len=out_len, k_dc=k_dc, k_dn=k_dn)

    grid_spec = pltpu.PrefetchScalarGridSpec(
        num_scalar_prefetch=0,
        grid=(g,),
        in_specs=[
            pl.BlockSpec((1, c_in, wl), lambda i: (i, 0, 0)),        # packed input
            full_spec((c_out, k_dc * c_in)),                         # DC1.conv1
            full_spec((c_out, 1)), full_spec((c_out, 1)),            # DC1.ln
            full_spec((c_out, k_dc * c_out)),                        # DC1.conv2
            full_spec((c_out, k_dc * c_out)),                        # DC2.conv1
            full_spec((c_out, 1)), full_spec((c_out, 1)),            # DC2.ln
            full_spec((c_out, k_dc * c_out)),                        # DC2.conv2
            full_spec((c_out, k_dn * c_out)),                        # downdim
        ],
        out_specs=pl.BlockSpec((1, bt, c_out, out_len), lambda i: (i, 0, 0, 0)),
    )

    # Rough per-step working-set estimate; raise the scoped VMEM limit only when
    # needed (v7x has 64 MiB physical VMEM, 128 MiB on v5e/v6e).
    vmem_est = 4 * wl * c_out * (2 * k_dc + 8) + 4 * seg_len * out_len
    compiler_params = pltpu.CompilerParams(
        dimension_semantics=("parallel",),      # batch groups shard across TCs on v7x
        vmem_limit_bytes=(64 * 1024 * 1024 if vmem_est > 8 * 1024 * 1024 else None),
    )

    out = pl.pallas_call(
        kernel,
        out_shape=jax.ShapeDtypeStruct((g, bt, c_out, out_len), jnp.float32),
        grid_spec=grid_spec,
        compiler_params=compiler_params,
    )(xp, w11, g1, b1, w12, w21, g2, b2, w22, wd)
    return out.reshape(B, c_out, out_len)


def init_params(key, c_in, c_out, k_dc=5, k_down=3, scale=0.1):
    ks = jax.random.split(key, 11)

    def nrm(k, shape, s=scale):
        return jax.random.normal(k, shape, dtype=jnp.float32) * s

    return {
        "wemb": nrm(ks[0], (c_in, 1)),              # nn.Linear(1, c_in).weight
        "bemb": nrm(ks[1], (c_in,)),                # nn.Linear(1, c_in).bias
        "w11": nrm(ks[2], (c_out, c_in, k_dc)),     # Conv1d weights (O, I, K)
        "g1": 1.0 + nrm(ks[3], (c_out,)),           # GroupNorm affine (perturbed
        "be1": nrm(ks[4], (c_out,)),                #  so the self-check covers it)
        "w12": nrm(ks[5], (c_out, c_out, k_dc)),
        "w21": nrm(ks[6], (c_out, c_out, k_dc)),
        "g2": 1.0 + nrm(ks[7], (c_out,)),
        "be2": nrm(ks[8], (c_out,)),
        "w22": nrm(ks[9], (c_out, c_out, k_dc)),
        "wd": nrm(ks[10], (c_out, c_out, k_down)),
    }


def down_forward_ref(x, t_embedding, params, stridex):
    """Pure-JAX/XLA reference of Down.forward (used only for the self-check)."""
    B = x.shape[0]
    t_col = t_embedding.reshape(B, 1) @ params["wemb"].T + params["bemb"][None, :]
    h = x + t_col[:, :, None]

    def conv1d(v, w, stride=1):
        pad = (w.shape[2] - 1) // 2
        return jax.lax.conv_general_dilated(
            v, w, window_strides=(stride,), padding=[(pad, pad)],
            dimension_numbers=("NCH", "OIH", "NCH"),
            precision=jax.lax.Precision.HIGHEST)

    def gn(v, gamma, beta):
        mu = jnp.mean(v, axis=(1, 2), keepdims=True)
        var = jnp.mean(jnp.square(v - mu), axis=(1, 2), keepdims=True)
        return ((v - mu) * jax.lax.rsqrt(var + _GN_EPS) * gamma[None, :, None]
                + beta[None, :, None])

    gelu = lambda v: jax.nn.gelu(v, approximate=False)
    h = gelu(gn(conv1d(h, params["w11"]), params["g1"], params["be1"]))
    h = gelu(conv1d(h, params["w12"]))
    h = gelu(gn(conv1d(h, params["w21"]), params["g2"], params["be2"]))
    h = gelu(conv1d(h, params["w22"]))
    return conv1d(h, params["wd"], stride=stridex)


if __name__ == "__main__":
    B, C_IN, C_OUT, L, STRIDE = 2, 4, 8, 16, 2
    root = jax.random.PRNGKey(0)
    k_param, k_x, k_t = jax.random.split(root, 3)

    params = init_params(k_param, C_IN, C_OUT)
    x = jax.random.normal(k_x, (B, C_IN, L), dtype=jnp.float32)
    t_embedding = jax.random.normal(k_t, (B, 1), dtype=jnp.float32)

    out = down_forward(x, t_embedding, params, STRIDE)
    jax.block_until_ready(out)

    expected_L = (L + 2 * 1 - 3) // STRIDE + 1   # PyTorch Conv1d output length
    assert out.shape == (B, C_OUT, expected_L), out.shape
    assert bool(jnp.all(jnp.isfinite(out)))

    ref = down_forward_ref(x, t_embedding, params, STRIDE)
    max_err = float(jnp.max(jnp.abs(out - ref)))
    assert max_err < 3e-2, f"max abs err vs pure-JAX reference = {max_err}"
    print("KERNEL_OK")
</pallas_src>

<mosaic_0001>
module attributes {stable_mosaic.version = 11 : i64} {
  func.func @_down_kernel(%arg0: i32, %arg1: memref<1x4x40xf32, #tpu.memory_space<vmem>>, %arg2: memref<8x20xf32, #tpu.memory_space<vmem>>, %arg3: memref<8x1xf32, #tpu.memory_space<vmem>>, %arg4: memref<8x1xf32, #tpu.memory_space<vmem>>, %arg5: memref<8x40xf32, #tpu.memory_space<vmem>>, %arg6: memref<8x40xf32, #tpu.memory_space<vmem>>, %arg7: memref<8x1xf32, #tpu.memory_space<vmem>>, %arg8: memref<8x1xf32, #tpu.memory_space<vmem>>, %arg9: memref<8x40xf32, #tpu.memory_space<vmem>>, %arg10: memref<8x24xf32, #tpu.memory_space<vmem>>, %arg11: memref<1x2x8x8xf32, #tpu.memory_space<vmem>>) attributes {dimension_semantics = [#tpu.dimension_semantics<parallel>], iteration_bounds = array<i64: 1>, scalar_prefetch = 0 : i64, scratch_operands = 0 : i64, tpu.core_type = #tpu.core_type<tc>, window_params = [{transform_indices = @transform_0, window_bounds = array<i64: 1, 4, 40>}, {pipeline_mode = #tpu.pipeline_mode<synchronous>, transform_indices = @transform_1, window_bounds = array<i64: 8, 20>}, {pipeline_mode = #tpu.pipeline_mode<synchronous>, transform_indices = @transform_2, window_bounds = array<i64: 8, 1>}, {pipeline_mode = #tpu.pipeline_mode<synchronous>, transform_indices = @transform_3, window_bounds = array<i64: 8, 1>}, {pipeline_mode = #tpu.pipeline_mode<synchronous>, transform_indices = @transform_4, window_bounds = array<i64: 8, 40>}, {pipeline_mode = #tpu.pipeline_mode<synchronous>, transform_indices = @transform_5, window_bounds = array<i64: 8, 40>}, {pipeline_mode = #tpu.pipeline_mode<synchronous>, transform_indices = @transform_6, window_bounds = array<i64: 8, 1>}, {pipeline_mode = #tpu.pipeline_mode<synchronous>, transform_indices = @transform_7, window_bounds = array<i64: 8, 1>}, {pipeline_mode = #tpu.pipeline_mode<synchronous>, transform_indices = @transform_8, window_bounds = array<i64: 8, 40>}, {pipeline_mode = #tpu.pipeline_mode<synchronous>, transform_indices = @transform_9, window_bounds = array<i64: 8, 24>}, {transform_indices = @transform_10, window_bounds = array<i64: 1, 2, 8, 8>}]} {
    %0 = tpu.iota {dimensions = array<i32: 1>} : vector<1x40xi32>
    %cst = arith.constant 0.000000e+00 : f32
    %1 = vector.broadcast %cst : f32 to vector<1x40xf32>
    %c2_i32 = arith.constant 2 : i32
    %2 = vector.broadcast %c2_i32 : i32 to vector<1x40xi32>
    %3 = arith.cmpi sge, %0, %2 : vector<1x40xi32>
    %c18_i32 = arith.constant 18 : i32
    %4 = vector.broadcast %c18_i32 : i32 to vector<1x40xi32>
    %5 = arith.cmpi slt, %0, %4 : vector<1x40xi32>
    %6 = arith.andi %3, %5 : vector<1x40xi1>
    %cst_0 = arith.constant 1.000000e+00 : f32
    %cst_1 = arith.constant 0.000000e+00 : f32
    %7 = vector.broadcast %cst_0 : f32 to vector<1x40xf32>
    %8 = vector.broadcast %cst_1 : f32 to vector<1x40xf32>
    %9 = arith.select %6, %7, %8 : vector<1x40xi1>, vector<1x40xf32>
    %10 = arith.addf %1, %9 : vector<1x40xf32>
    %c22_i32 = arith.constant 22 : i32
    %11 = vector.broadcast %c22_i32 : i32 to vector<1x40xi32>
    %12 = arith.cmpi sge, %0, %11 : vector<1x40xi32>
    %c38_i32 = arith.constant 38 : i32
    %13 = vector.broadcast %c38_i32 : i32 to vector<1x40xi32>
    %14 = arith.cmpi slt, %0, %13 : vector<1x40xi32>
    %15 = arith.andi %12, %14 : vector<1x40xi1>
    %cst_2 = arith.constant 1.000000e+00 : f32
    %cst_3 = arith.constant 0.000000e+00 : f32
    %16 = vector.broadcast %cst_2 : f32 to vector<1x40xf32>
    %17 = vector.broadcast %cst_3 : f32 to vector<1x40xf32>
    %18 = arith.select %15, %16, %17 : vector<1x40xi1>, vector<1x40xf32>
    %19 = arith.addf %10, %18 : vector<1x40xf32>
    %20 = tpu.iota {dimensions = array<i32: 0>} : vector<40x2xi32>
    %21 = tpu.iota {dimensions = array<i32: 1>} : vector<40x2xi32>
    %c20_i32 = arith.constant 20 : i32
    %22 = vector.broadcast %c20_i32 : i32 to vector<40x2xi32>
    %23 = arith.muli %21, %22 : vector<40x2xi32>
    %24 = arith.cmpi sge, %20, %23 : vector<40x2xi32>
    %c1_i32 = arith.constant 1 : i32
    %25 = vector.broadcast %c1_i32 : i32 to vector<40x2xi32>
    %26 = arith.addi %21, %25 : vector<40x2xi32>
    %c20_i32_4 = arith.constant 20 : i32
    %27 = vector.broadcast %c20_i32_4 : i32 to vector<40x2xi32>
    %28 = arith.muli %26, %27 : vector<40x2xi32>
    %29 = arith.cmpi slt, %20, %28 : vector<40x2xi32>
    %30 = arith.andi %24, %29 : vector<40x2xi1>
    %cst_5 = arith.constant 1.000000e+00 : f32
    %cst_6 = arith.constant 0.000000e+00 : f32
    %31 = vector.broadcast %cst_5 : f32 to vector<40x2xf32>
    %32 = vector.broadcast %cst_6 : f32 to vector<40x2xf32>
    %33 = arith.select %30, %31, %32 : vector<40x2xi1>, vector<40x2xf32>
    %34 = tpu.iota {dimensions = array<i32: 0>} : vector<2x40xi32>
    %35 = tpu.iota {dimensions = array<i32: 1>} : vector<2x40xi32>
    %c20_i32_7 = arith.constant 20 : i32
    %36 = vector.broadcast %c20_i32_7 : i32 to vector<2x40xi32>
    %37 = arith.muli %34, %36 : vector<2x40xi32>
    %38 = arith.cmpi sge, %35, %37 : vector<2x40xi32>
    %c1_i32_8 = arith.constant 1 : i32
    %39 = vector.broadcast %c1_i32_8 : i32 to vector<2x40xi32>
    %40 = arith.addi %34, %39 : vector<2x40xi32>
    %c20_i32_9 = arith.constant 20 : i32
    %41 = vector.broadcast %c20_i32_9 : i32 to vector<2x40xi32>
    %42 = arith.muli %40, %41 : vector<2x40xi32>
    %43 = arith.cmpi slt, %35, %42 : vector<2x40xi32>
    %44 = arith.andi %38, %43 : vector<2x40xi1>
    %cst_10 = arith.constant 1.000000e+00 : f32
    %cst_11 = arith.constant 0.000000e+00 : f32
    %45 = vector.broadcast %cst_10 : f32 to vector<2x40xf32>
    %46 = vector.broadcast %cst_11 : f32 to vector<2x40xf32>
    %47 = arith.select %44, %45, %46 : vector<2x40xi1>, vector<2x40xf32>
    %c0 = arith.constant 0 : index
    %c0_12 = arith.constant 0 : index
    %c0_13 = arith.constant 0 : index
    %48 = vector.load %arg1[%c0, %c0_12, %c0_13] : memref<1x4x40xf32, #tpu.memory_space<vmem>>, vector<1x4x40xf32>
    %49 = vector.shape_cast %48 : vector<1x4x40xf32> to vector<4x40xf32>
    %c0_14 = arith.constant 0 : index
    %c0_15 = arith.constant 0 : index
    %50 = vector.load %arg2[%c0_14, %c0_15] : memref<8x20xf32, #tpu.memory_space<vmem>>, vector<8x20xf32>
    %51 = vector.broadcast %19 : vector<1x40xf32> to vector<4x40xf32>
    %52 = arith.mulf %49, %51 : vector<4x40xf32>
    %cst_16 = arith.constant 0.000000e+00 : f32
    %53 = vector.broadcast %cst_16 : f32 to vector<4x2xf32>
    %54 = tpu.concatenate %53, %52, %53 in 1 : vector<4x2xf32>, vector<4x40xf32>, vector<4x2xf32> -> vector<4x44xf32>
    %55 = vector.extract_strided_slice %54 {offsets = [0, 0], sizes = [4, 40], strides = [1, 1]} : vector<4x44xf32> to vector<4x40xf32>
    %56 = vector.extract_strided_slice %54 {offsets = [0, 1], sizes = [4, 40], strides = [1, 1]} : vector<4x44xf32> to vector<4x40xf32>
    %57 = vector.extract_strided_slice %54 {offsets = [0, 2], sizes = [4, 40], strides = [1, 1]} : vector<4x44xf32> to vector<4x40xf32>
    %58 = vector.extract_strided_slice %54 {offsets = [0, 3], sizes = [4, 40], strides = [1, 1]} : vector<4x44xf32> to vector<4x40xf32>
    %59 = vector.extract_strided_slice %54 {offsets = [0, 4], sizes = [4, 40], strides = [1, 1]} : vector<4x44xf32> to vector<4x40xf32>
    %60 = tpu.concatenate %55, %56, %57, %58, %59 in 0 : vector<4x40xf32>, vector<4x40xf32>, vector<4x40xf32>, vector<4x40xf32>, vector<4x40xf32> -> vector<20x40xf32>
    %cst_17 = arith.constant dense<0.000000e+00> : vector<8x40xf32>
    %61 = tpu.matmul %50, %60, %cst_17 {dimension_numbers = #tpu.dot_dimension_numbers<[1], [0], [0], [1], [0, 0, 1, 1], [], []>} : vector<8x20xf32>, vector<20x40xf32>, vector<8x40xf32> -> vector<8x40xf32>
    %c0_18 = arith.constant 0 : index
    %c0_19 = arith.constant 0 : index
    %62 = vector.load %arg3[%c0_18, %c0_19] : memref<8x1xf32, #tpu.memory_space<vmem>>, vector<8x1xf32>
    %c0_20 = arith.constant 0 : index
    %c0_21 = arith.constant 0 : index
    %63 = vector.load %arg4[%c0_20, %c0_21] : memref<8x1xf32, #tpu.memory_space<vmem>>, vector<8x1xf32>
    %64 = vector.broadcast %19 : vector<1x40xf32> to vector<8x40xf32>
    %65 = arith.mulf %61, %64 : vector<8x40xf32>
    %cst_22 = arith.constant dense<0.000000e+00> : vector<40xf32>
    %66 = vector.multi_reduction <add>, %65, %cst_22 [0] : vector<8x40xf32> to vector<40xf32>
    %67 = vector.shape_cast %66 : vector<40xf32> to vector<1x40xf32>
    %cst_23 = arith.constant dense<0.000000e+00> : vector<1x2xf32>
    %68 = tpu.matmul %67, %33, %cst_23 {dimension_numbers = #tpu.dot_dimension_numbers<[1], [0], [0], [1], [0, 0, 1, 1], [], []>} : vector<1x40xf32>, vector<40x2xf32>, vector<1x2xf32> -> vector<1x2xf32>
    %69 = arith.mulf %65, %65 : vector<8x40xf32>
    %cst_24 = arith.constant dense<0.000000e+00> : vector<40xf32>
    %70 = vector.multi_reduction <add>, %69, %cst_24 [0] : vector<8x40xf32> to vector<40xf32>
    %71 = vector.shape_cast %70 : vector<40xf32> to vector<1x40xf32>
    %cst_25 = arith.constant dense<0.000000e+00> : vector<1x2xf32>
    %72 = tpu.matmul %71, %33, %cst_25 {dimension_numbers = #tpu.dot_dimension_numbers<[1], [0], [0], [1], [0, 0, 1, 1], [], []>} : vector<1x40xf32>, vector<40x2xf32>, vector<1x2xf32> -> vector<1x2xf32>
    %cst_26 = arith.constant 7.812500e-03 : f32
    %73 = vector.broadcast %cst_26 : f32 to vector<1x2xf32>
    %74 = arith.mulf %68, %73 : vector<1x2xf32>
    %cst_27 = arith.constant 7.812500e-03 : f32
    %75 = vector.broadcast %cst_27 : f32 to vector<1x2xf32>
    %76 = arith.mulf %72, %75 : vector<1x2xf32>
    %77 = arith.mulf %74, %74 : vector<1x2xf32>
    %78 = arith.subf %76, %77 : vector<1x2xf32>
    %cst_28 = arith.constant 9.99999974E-6 : f32
    %79 = vector.broadcast %cst_28 : f32 to vector<1x2xf32>
    %80 = arith.addf %78, %79 : vector<1x2xf32>
    %81 = math.rsqrt %80 : vector<1x2xf32>
    %cst_29 = arith.constant dense<0.000000e+00> : vector<1x40xf32>
    %82 = tpu.matmul %74, %47, %cst_29 {dimension_numbers = #tpu.dot_dimension_numbers<[1], [0], [0], [1], [0, 0, 1, 1], [], []>} : vector<1x2xf32>, vector<2x40xf32>, vector<1x40xf32> -> vector<1x40xf32>
    %cst_30 = arith.constant dense<0.000000e+00> : vector<1x40xf32>
    %83 = tpu.matmul %81, %47, %cst_30 {dimension_numbers = #tpu.dot_dimension_numbers<[1], [0], [0], [1], [0, 0, 1, 1], [], []>} : vector<1x2xf32>, vector<2x40xf32>, vector<1x40xf32> -> vector<1x40xf32>
    %84 = vector.broadcast %82 : vector<1x40xf32> to vector<8x40xf32>
    %85 = arith.subf %61, %84 : vector<8x40xf32>
    %86 = vector.broadcast %83 : vector<1x40xf32> to vector<8x40xf32>
    %87 = arith.mulf %85, %86 : vector<8x40xf32>
    %88 = vector.broadcast %62 : vector<8x1xf32> to vector<8x40xf32>
    %89 = arith.mulf %87, %88 : vector<8x40xf32>
    %90 = vector.broadcast %63 : vector<8x1xf32> to vector<8x40xf32>
    %91 = arith.addf %89, %90 : vector<8x40xf32>
    %cst_31 = arith.constant 0.707106769 : f32
    %92 = vector.broadcast %cst_31 : f32 to vector<8x40xf32>
    %93 = arith.mulf %91, %92 : vector<8x40xf32>
    %94 = math.absf %93 : vector<8x40xf32>
    %cst_32 = arith.constant 0.000000e+00 : f32
    %95 = vector.broadcast %cst_32 : f32 to vector<8x40xf32>
    %96 = arith.cmpf oge, %93, %95 : vector<8x40xf32>
    %cst_33 = arith.constant 1.000000e+00 : f32
    %cst_34 = arith.constant -1.000000e+00 : f32
    %97 = vector.broadcast %cst_33 : f32 to vector<8x40xf32>
    %98 = vector.broadcast %cst_34 : f32 to vector<8x40xf32>
    %99 = arith.select %96, %97, %98 : vector<8x40xi1>, vector<8x40xf32>
    %cst_35 = arith.constant 0.327591091 : f32
    %100 = vector.broadcast %cst_35 : f32 to vector<8x40xf32>
    %101 = arith.mulf %100, %94 : vector<8x40xf32>
    %cst_36 = arith.constant 1.000000e+00 : f32
    %102 = vector.broadcast %cst_36 : f32 to vector<8x40xf32>
    %103 = arith.addf %102, %101 : vector<8x40xf32>
    %104 = tpu.reciprocal %103 {approx = true} : vector<8x40xf32> -> vector<8x40xf32>
    %cst_37 = arith.constant 1.06140542 : f32
    %105 = vector.broadcast %cst_37 : f32 to vector<8x40xf32>
    %106 = arith.mulf %105, %104 : vector<8x40xf32>
    %cst_38 = arith.constant -1.45315206 : f32
    %107 = vector.broadcast %cst_38 : f32 to vector<8x40xf32>
    %108 = arith.addf %106, %107 : vector<8x40xf32>
    %109 = arith.mulf %108, %104 : vector<8x40xf32>
    %cst_39 = arith.constant 1.42141378 : f32
    %110 = vector.broadcast %cst_39 : f32 to vector<8x40xf32>
    %111 = arith.addf %109, %110 : vector<8x40xf32>
    %112 = arith.mulf %111, %104 : vector<8x40xf32>
    %cst_40 = arith.constant -0.284496725 : f32
    %113 = vector.broadcast %cst_40 : f32 to vector<8x40xf32>
    %114 = arith.addf %112, %113 : vector<8x40xf32>
    %115 = arith.mulf %114, %104 : vector<8x40xf32>
    %cst_41 = arith.constant 0.254829586 : f32
    %116 = vector.broadcast %cst_41 : f32 to vector<8x40xf32>
    %117 = arith.addf %115, %116 : vector<8x40xf32>
    %118 = arith.mulf %117, %104 : vector<8x40xf32>
    %cst_42 = arith.constant 0.000000e+00 : f32
    %119 = vector.broadcast %cst_42 : f32 to vector<8x40xf32>
    %120 = arith.subf %119, %94 : vector<8x40xf32>
    %121 = arith.mulf %120, %94 : vector<8x40xf32>
    %122 = math.exp %121 : vector<8x40xf32>
    %123 = arith.mulf %118, %122 : vector<8x40xf32>
    %cst_43 = arith.constant 1.000000e+00 : f32
    %124 = vector.broadcast %cst_43 : f32 to vector<8x40xf32>
    %125 = arith.subf %124, %123 : vector<8x40xf32>
    %126 = arith.mulf %99, %125 : vector<8x40xf32>
    %cst_44 = arith.constant 5.000000e-01 : f32
    %127 = vector.broadcast %cst_44 : f32 to vector<8x40xf32>
    %128 = arith.mulf %127, %91 : vector<8x40xf32>
    %cst_45 = arith.constant 1.000000e+00 : f32
    %129 = vector.broadcast %cst_45 : f32 to vector<8x40xf32>
    %130 = arith.addf %129, %126 : vector<8x40xf32>
    %131 = arith.mulf %128, %130 : vector<8x40xf32>
    %c0_46 = arith.constant 0 : index
    %c0_47 = arith.constant 0 : index
    %132 = vector.load %arg5[%c0_46, %c0_47] : memref<8x40xf32, #tpu.memory_space<vmem>>, vector<8x40xf32>
    %133 = vector.broadcast %19 : vector<1x40xf32> to vector<8x40xf32>
    %134 = arith.mulf %131, %133 : vector<8x40xf32>
    %cst_48 = arith.constant 0.000000e+00 : f32
    %135 = vector.broadcast %cst_48 : f32 to vector<8x2xf32>
    %136 = tpu.concatenate %135, %134, %135 in 1 : vector<8x2xf32>, vector<8x40xf32>, vector<8x2xf32> -> vector<8x44xf32>
    %137 = vector.extract_strided_slice %136 {offsets = [0, 0], sizes = [8, 40], strides = [1, 1]} : vector<8x44xf32> to vector<8x40xf32>
    %138 = vector.extract_strided_slice %136 {offsets = [0, 1], sizes = [8, 40], strides = [1, 1]} : vector<8x44xf32> to vector<8x40xf32>
    %139 = vector.extract_strided_slice %136 {offsets = [0, 2], sizes = [8, 40], strides = [1, 1]} : vector<8x44xf32> to vector<8x40xf32>
    %140 = vector.extract_strided_slice %136 {offsets = [0, 3], sizes = [8, 40], strides = [1, 1]} : vector<8x44xf32> to vector<8x40xf32>
    %141 = vector.extract_strided_slice %136 {offsets = [0, 4], sizes = [8, 40], strides = [1, 1]} : vector<8x44xf32> to vector<8x40xf32>
    %142 = tpu.concatenate %137, %138, %139, %140, %141 in 0 : vector<8x40xf32>, vector<8x40xf32>, vector<8x40xf32>, vector<8x40xf32>, vector<8x40xf32> -> vector<40x40xf32>
    %cst_49 = arith.constant dense<0.000000e+00> : vector<8x40xf32>
    %143 = tpu.matmul %132, %142, %cst_49 {dimension_numbers = #tpu.dot_dimension_numbers<[1], [0], [0], [1], [0, 0, 1, 1], [], []>} : vector<8x40xf32>, vector<40x40xf32>, vector<8x40xf32> -> vector<8x40xf32>
    %cst_50 = arith.constant 0.707106769 : f32
    %144 = vector.broadcast %cst_50 : f32 to vector<8x40xf32>
    %145 = arith.mulf %143, %144 : vector<8x40xf32>
    %146 = math.absf %145 : vector<8x40xf32>
    %cst_51 = arith.constant 0.000000e+00 : f32
    %147 = vector.broadcast %cst_51 : f32 to vector<8x40xf32>
    %148 = arith.cmpf oge, %145, %147 : vector<8x40xf32>
    %cst_52 = arith.constant 1.000000e+00 : f32
    %cst_53 = arith.constant -1.000000e+00 : f32
    %149 = vector.broadcast %cst_52 : f32 to vector<8x40xf32>
    %150 = vector.broadcast %cst_53 : f32 to vector<8x40xf32>
    %151 = arith.select %148, %149, %150 : vector<8x40xi1>, vector<8x40xf32>
    %cst_54 = arith.constant 0.327591091 : f32
    %152 = vector.broadcast %cst_54 : f32 to vector<8x40xf32>
    %153 = arith.mulf %152, %146 : vector<8x40xf32>
    %cst_55 = arith.constant 1.000000e+00 : f32
    %154 = vector.broadcast %cst_55 : f32 to vector<8x40xf32>
    %155 = arith.addf %154, %153 : vector<8x40xf32>
    %156 = tpu.reciprocal %155 {approx = true} : vector<8x40xf32> -> vector<8x40xf32>
    %cst_56 = arith.constant 1.06140542 : f32
    %157 = vector.broadcast %cst_56 : f32 to vector<8x40xf32>
    %158 = arith.mulf %157, %156 : vector<8x40xf32>
    %cst_57 = arith.constant -1.45315206 : f32
    %159 = vector.broadcast %cst_57 : f32 to vector<8x40xf32>
    %160 = arith.addf %158, %159 : vector<8x40xf32>
    %161 = arith.mulf %160, %156 : vector<8x40xf32>
    %cst_58 = arith.constant 1.42141378 : f32
    %162 = vector.broadcast %cst_58 : f32 to vector<8x40xf32>
    %163 = arith.addf %161, %162 : vector<8x40xf32>
    %164 = arith.mulf %163, %156 : vector<8x40xf32>
    %cst_59 = arith.constant -0.284496725 : f32
    %165 = vector.broadcast %cst_59 : f32 to vector<8x40xf32>
    %166 = arith.addf %164, %165 : vector<8x40xf32>
    %167 = arith.mulf %166, %156 : vector<8x40xf32>
    %cst_60 = arith.constant 0.254829586 : f32
    %168 = vector.broadcast %cst_60 : f32 to vector<8x40xf32>
    %169 = arith.addf %167, %168 : vector<8x40xf32>
    %170 = arith.mulf %169, %156 : vector<8x40xf32>
    %cst_61 = arith.constant 0.000000e+00 : f32
    %171 = vector.broadcast %cst_61 : f32 to vector<8x40xf32>
    %172 = arith.subf %171, %146 : vector<8x40xf32>
    %173 = arith.mulf %172, %146 : vector<8x40xf32>
    %174 = math.exp %173 : vector<8x40xf32>
    %175 = arith.mulf %170, %174 : vector<8x40xf32>
    %cst_62 = arith.constant 1.000000e+00 : f32
    %176 = vector.broadcast %cst_62 : f32 to vector<8x40xf32>
    %177 = arith.subf %176, %175 : vector<8x40xf32>
    %178 = arith.mulf %151, %177 : vector<8x40xf32>
    %cst_63 = arith.constant 5.000000e-01 : f32
    %179 = vector.broadcast %cst_63 : f32 to vector<8x40xf32>
    %180 = arith.mulf %179, %143 : vector<8x40xf32>
    %cst_64 = arith.constant 1.000000e+00 : f32
    %181 = vector.broadcast %cst_64 : f32 to vector<8x40xf32>
    %182 = arith.addf %181, %178 : vector<8x40xf32>
    %183 = arith.mulf %180, %182 : vector<8x40xf32>
    %c0_65 = arith.constant 0 : index
    %c0_66 = arith.constant 0 : index
    %184 = vector.load %arg6[%c0_65, %c0_66] : memref<8x40xf32, #tpu.memory_space<vmem>>, vector<8x40xf32>
    %185 = vector.broadcast %19 : vector<1x40xf32> to vector<8x40xf32>
    %186 = arith.mulf %183, %185 : vector<8x40xf32>
    %cst_67 = arith.constant 0.000000e+00 : f32
    %187 = vector.broadcast %cst_67 : f32 to vector<8x2xf32>
    %188 = tpu.concatenate %187, %186, %187 in 1 : vector<8x2xf32>, vector<8x40xf32>, vector<8x2xf32> -> vector<8x44xf32>
    %189 = vector.extract_strided_slice %188 {offsets = [0, 0], sizes = [8, 40], strides = [1, 1]} : vector<8x44xf32> to vector<8x40xf32>
    %190 = vector.extract_strided_slice %188 {offsets = [0, 1], sizes = [8, 40], strides = [1, 1]} : vector<8x44xf32> to vector<8x40xf32>
    %191 = vector.extract_strided_slice %188 {offsets = [0, 2], sizes = [8, 40], strides = [1, 1]} : vector<8x44xf32> to vector<8x40xf32>
    %192 = vector.extract_strided_slice %188 {offsets = [0, 3], sizes = [8, 40], strides = [1, 1]} : vector<8x44xf32> to vector<8x40xf32>
    %193 = vector.extract_strided_slice %188 {offsets = [0, 4], sizes = [8, 40], strides = [1, 1]} : vector<8x44xf32> to vector<8x40xf32>
    %194 = tpu.concatenate %189, %190, %191, %192, %193 in 0 : vector<8x40xf32>, vector<8x40xf32>, vector<8x40xf32>, vector<8x40xf32>, vector<8x40xf32> -> vector<40x40xf32>
    %cst_68 = arith.constant dense<0.000000e+00> : vector<8x40xf32>
    %195 = tpu.matmul %184, %194, %cst_68 {dimension_numbers = #tpu.dot_dimension_numbers<[1], [0], [0], [1], [0, 0, 1, 1], [], []>} : vector<8x40xf32>, vector<40x40xf32>, vector<8x40xf32> -> vector<8x40xf32>
    %c0_69 = arith.constant 0 : index
    %c0_70 = arith.constant 0 : index
    %196 = vector.load %arg7[%c0_69, %c0_70] : memref<8x1xf32, #tpu.memory_space<vmem>>, vector<8x1xf32>
    %c0_71 = arith.constant 0 : index
    %c0_72 = arith.constant 0 : index
    %197 = vector.load %arg8[%c0_71, %c0_72] : memref<8x1xf32, #tpu.memory_space<vmem>>, vector<8x1xf32>
    %198 = vector.broadcast %19 : vector<1x40xf32> to vector<8x40xf32>
    %199 = arith.mulf %195, %198 : vector<8x40xf32>
    %cst_73 = arith.constant dense<0.000000e+00> : vector<40xf32>
    %200 = vector.multi_reduction <add>, %199, %cst_73 [0] : vector<8x40xf32> to vector<40xf32>
    %201 = vector.shape_cast %200 : vector<40xf32> to vector<1x40xf32>
    %cst_74 = arith.constant dense<0.000000e+00> : vector<1x2xf32>
    %202 = tpu.matmul %201, %33, %cst_74 {dimension_numbers = #tpu.dot_dimension_numbers<[1], [0], [0], [1], [0, 0, 1, 1], [], []>} : vector<1x40xf32>, vector<40x2xf32>, vector<1x2xf32> -> vector<1x2xf32>
    %203 = arith.mulf %199, %199 : vector<8x40xf32>
    %cst_75 = arith.constant dense<0.000000e+00> : vector<40xf32>
    %204 = vector.multi_reduction <add>, %203, %cst_75 [0] : vector<8x40xf32> to vector<40xf32>
    %205 = vector.shape_cast %204 : vector<40xf32> to vector<1x40xf32>
    %cst_76 = arith.constant dense<0.000000e+00> : vector<1x2xf32>
    %206 = tpu.matmul %205, %33, %cst_76 {dimension_numbers = #tpu.dot_dimension_numbers<[1], [0], [0], [1], [0, 0, 1, 1], [], []>} : vector<1x40xf32>, vector<40x2xf32>, vector<1x2xf32> -> vector<1x2xf32>
    %cst_77 = arith.constant 7.812500e-03 : f32
    %207 = vector.broadcast %cst_77 : f32 to vector<1x2xf32>
    %208 = arith.mulf %202, %207 : vector<1x2xf32>
    %cst_78 = arith.constant 7.812500e-03 : f32
    %209 = vector.broadcast %cst_78 : f32 to vector<1x2xf32>
    %210 = arith.mulf %206, %209 : vector<1x2xf32>
    %211 = arith.mulf %208, %208 : vector<1x2xf32>
    %212 = arith.subf %210, %211 : vector<1x2xf32>
    %cst_79 = arith.constant 9.99999974E-6 : f32
    %213 = vector.broadcast %cst_79 : f32 to vector<1x2xf32>
    %214 = arith.addf %212, %213 : vector<1x2xf32>
    %215 = math.rsqrt %214 : vector<1x2xf32>
    %cst_80 = arith.constant dense<0.000000e+00> : vector<1x40xf32>
    %216 = tpu.matmul %208, %47, %cst_80 {dimension_numbers = #tpu.dot_dimension_numbers<[1], [0], [0], [1], [0, 0, 1, 1], [], []>} : vector<1x2xf32>, vector<2x40xf32>, vector<1x40xf32> -> vector<1x40xf32>
    %cst_81 = arith.constant dense<0.000000e+00> : vector<1x40xf32>
    %217 = tpu.matmul %215, %47, %cst_81 {dimension_numbers = #tpu.dot_dimension_numbers<[1], [0], [0], [1], [0, 0, 1, 1], [], []>} : vector<1x2xf32>, vector<2x40xf32>, vector<1x40xf32> -> vector<1x40xf32>
    %218 = vector.broadcast %216 : vector<1x40xf32> to vector<8x40xf32>
    %219 = arith.subf %195, %218 : vector<8x40xf32>
    %220 = vector.broadcast %217 : vector<1x40xf32> to vector<8x40xf32>
    %221 = arith.mulf %219, %220 : vector<8x40xf32>
    %222 = vector.broadcast %196 : vector<8x1xf32> to vector<8x40xf32>
    %223 = arith.mulf %221, %222 : vector<8x40xf32>
    %224 = vector.broadcast %197 : vector<8x1xf32> to vector<8x40xf32>
    %225 = arith.addf %223, %224 : vector<8x40xf32>
    %cst_82 = arith.constant 0.707106769 : f32
    %226 = vector.broadcast %cst_82 : f32 to vector<8x40xf32>
    %227 = arith.mulf %225, %226 : vector<8x40xf32>
    %228 = math.absf %227 : vector<8x40xf32>
    %cst_83 = arith.constant 0.000000e+00 : f32
    %229 = vector.broadcast %cst_83 : f32 to vector<8x40xf32>
    %230 = arith.cmpf oge, %227, %229 : vector<8x40xf32>
    %cst_84 = arith.constant 1.000000e+00 : f32
    %cst_85 = arith.constant -1.000000e+00 : f32
    %231 = vector.broadcast %cst_84 : f32 to vector<8x40xf32>
    %232 = vector.broadcast %cst_85 : f32 to vector<8x40xf32>
    %233 = arith.select %230, %231, %232 : vector<8x40xi1>, vector<8x40xf32>
    %cst_86 = arith.constant 0.327591091 : f32
    %234 = vector.broadcast %cst_86 : f32 to vector<8x40xf32>
    %235 = arith.mulf %234, %228 : vector<8x40xf32>
    %cst_87 = arith.constant 1.000000e+00 : f32
    %236 = vector.broadcast %cst_87 : f32 to vector<8x40xf32>
    %237 = arith.addf %236, %235 : vector<8x40xf32>
    %238 = tpu.reciprocal %237 {approx = true} : vector<8x40xf32> -> vector<8x40xf32>
    %cst_88 = arith.constant 1.06140542 : f32
    %239 = vector.broadcast %cst_88 : f32 to vector<8x40xf32>
    %240 = arith.mulf %239, %238 : vector<8x40xf32>
    %cst_89 = arith.constant -1.45315206 : f32
    %241 = vector.broadcast %cst_89 : f32 to vector<8x40xf32>
    %242 = arith.addf %240, %241 : vector<8x40xf32>
    %243 = arith.mulf %242, %238 : vector<8x40xf32>
    %cst_90 = arith.constant 1.42141378 : f32
    %244 = vector.broadcast %cst_90 : f32 to vector<8x40xf32>
    %245 = arith.addf %243, %244 : vector<8x40xf32>
    %246 = arith.mulf %245, %238 : vector<8x40xf32>
    %cst_91 = arith.constant -0.284496725 : f32
    %247 = vector.broadcast %cst_91 : f32 to vector<8x40xf32>
    %248 = arith.addf %246, %247 : vector<8x40xf32>
    %249 = arith.mulf %248, %238 : vector<8x40xf32>
    %cst_92 = arith.constant 0.254829586 : f32
    %250 = vector.broadcast %cst_92 : f32 to vector<8x40xf32>
    %251 = arith.addf %249, %250 : vector<8x40xf32>
    %252 = arith.mulf %251, %238 : vector<8x40xf32>
    %cst_93 = arith.constant 0.000000e+00 : f32
    %253 = vector.broadcast %cst_93 : f32 to vector<8x40xf32>
    %254 = arith.subf %253, %228 : vector<8x40xf32>
    %255 = arith.mulf %254, %228 : vector<8x40xf32>
    %256 = math.exp %255 : vector<8x40xf32>
    %257 = arith.mulf %252, %256 : vector<8x40xf32>
    %cst_94 = arith.constant 1.000000e+00 : f32
    %258 = vector.broadcast %cst_94 : f32 to vector<8x40xf32>
    %259 = arith.subf %258, %257 : vector<8x40xf32>
    %260 = arith.mulf %233, %259 : vector<8x40xf32>
    %cst_95 = arith.constant 5.000000e-01 : f32
    %261 = vector.broadcast %cst_95 : f32 to vector<8x40xf32>
    %262 = arith.mulf %261, %225 : vector<8x40xf32>
    %cst_96 = arith.constant 1.000000e+00 : f32
    %263 = vector.broadcast %cst_96 : f32 to vector<8x40xf32>
    %264 = arith.addf %263, %260 : vector<8x40xf32>
    %265 = arith.mulf %262, %264 : vector<8x40xf32>
    %c0_97 = arith.constant 0 : index
    %c0_98 = arith.constant 0 : index
    %266 = vector.load %arg9[%c0_97, %c0_98] : memref<8x40xf32, #tpu.memory_space<vmem>>, vector<8x40xf32>
    %267 = vector.broadcast %19 : vector<1x40xf32> to vector<8x40xf32>
    %268 = arith.mulf %265, %267 : vector<8x40xf32>
    %cst_99 = arith.constant 0.000000e+00 : f32
    %269 = vector.broadcast %cst_99 : f32 to vector<8x2xf32>
    %270 = tpu.concatenate %269, %268, %269 in 1 : vector<8x2xf32>, vector<8x40xf32>, vector<8x2xf32> -> vector<8x44xf32>
    %271 = vector.extract_strided_slice %270 {offsets = [0, 0], sizes = [8, 40], strides = [1, 1]} : vector<8x44xf32> to vector<8x40xf32>
    %272 = vector.extract_strided_slice %270 {offsets = [0, 1], sizes = [8, 40], strides = [1, 1]} : vector<8x44xf32> to vector<8x40xf32>
    %273 = vector.extract_strided_slice %270 {offsets = [0, 2], sizes = [8, 40], strides = [1, 1]} : vector<8x44xf32> to vector<8x40xf32>
    %274 = vector.extract_strided_slice %270 {offsets = [0, 3], sizes = [8, 40], strides = [1, 1]} : vector<8x44xf32> to vector<8x40xf32>
    %275 = vector.extract_strided_slice %270 {offsets = [0, 4], sizes = [8, 40], strides = [1, 1]} : vector<8x44xf32> to vector<8x40xf32>
    %276 = tpu.concatenate %271, %272, %273, %274, %275 in 0 : vector<8x40xf32>, vector<8x40xf32>, vector<8x40xf32>, vector<8x40xf32>, vector<8x40xf32> -> vector<40x40xf32>
    %cst_100 = arith.constant dense<0.000000e+00> : vector<8x40xf32>
    %277 = tpu.matmul %266, %276, %cst_100 {dimension_numbers = #tpu.dot_dimension_numbers<[1], [0], [0], [1], [0, 0, 1, 1], [], []>} : vector<8x40xf32>, vector<40x40xf32>, vector<8x40xf32> -> vector<8x40xf32>
    %cst_101 = arith.constant 0.707106769 : f32
    %278 = vector.broadcast %cst_101 : f32 to vector<8x40xf32>
    %279 = arith.mulf %277, %278 : vector<8x40xf32>
    %280 = math.absf %279 : vector<8x40xf32>
    %cst_102 = arith.constant 0.000000e+00 : f32
    %281 = vector.broadcast %cst_102 : f32 to vector<8x40xf32>
    %282 = arith.cmpf oge, %279, %281 : vector<8x40xf32>
    %cst_103 = arith.constant 1.000000e+00 : f32
    %cst_104 = arith.constant -1.000000e+00 : f32
    %283 = vector.broadcast %cst_103 : f32 to vector<8x40xf32>
    %284 = vector.broadcast %cst_104 : f32 to vector<8x40xf32>
    %285 = arith.select %282, %283, %284 : vector<8x40xi1>, vector<8x40xf32>
    %cst_105 = arith.constant 0.327591091 : f32
    %286 = vector.broadcast %cst_105 : f32 to vector<8x40xf32>
    %287 = arith.mulf %286, %280 : vector<8x40xf32>
    %cst_106 = arith.constant 1.000000e+00 : f32
    %288 = vector.broadcast %cst_106 : f32 to vector<8x40xf32>
    %289 = arith.addf %288, %287 : vector<8x40xf32>
    %290 = tpu.reciprocal %289 {approx = true} : vector<8x40xf32> -> vector<8x40xf32>
    %cst_107 = arith.constant 1.06140542 : f32
    %291 = vector.broadcast %cst_107 : f32 to vector<8x40xf32>
    %292 = arith.mulf %291, %290 : vector<8x40xf32>
    %cst_108 = arith.constant -1.45315206 : f32
    %293 = vector.broadcast %cst_108 : f32 to vector<8x40xf32>
    %294 = arith.addf %292, %293 : vector<8x40xf32>
    %295 = arith.mulf %294, %290 : vector<8x40xf32>
    %cst_109 = arith.constant 1.42141378 : f32
    %296 = vector.broadcast %cst_109 : f32 to vector<8x40xf32>
    %297 = arith.addf %295, %296 : vector<8x40xf32>
    %298 = arith.mulf %297, %290 : vector<8x40xf32>
    %cst_110 = arith.constant -0.284496725 : f32
    %299 = vector.broadcast %cst_110 : f32 to vector<8x40xf32>
    %300 = arith.addf %298, %299 : vector<8x40xf32>
    %301 = arith.mulf %300, %290 : vector<8x40xf32>
    %cst_111 = arith.constant 0.254829586 : f32
    %302 = vector.broadcast %cst_111 : f32 to vector<8x40xf32>
    %303 = arith.addf %301, %302 : vector<8x40xf32>
    %304 = arith.mulf %303, %290 : vector<8x40xf32>
    %cst_112 = arith.constant 0.000000e+00 : f32
    %305 = vector.broadcast %cst_112 : f32 to vector<8x40xf32>
    %306 = arith.subf %305, %280 : vector<8x40xf32>
    %307 = arith.mulf %306, %280 : vector<8x40xf32>
    %308 = math.exp %307 : vector<8x40xf32>
    %309 = arith.mulf %304, %308 : vector<8x40xf32>
    %cst_113 = arith.constant 1.000000e+00 : f32
    %310 = vector.broadcast %cst_113 : f32 to vector<8x40xf32>
    %311 = arith.subf %310, %309 : vector<8x40xf32>
    %312 = arith.mulf %285, %311 : vector<8x40xf32>
    %cst_114 = arith.constant 5.000000e-01 : f32
    %313 = vector.broadcast %cst_114 : f32 to vector<8x40xf32>
    %314 = arith.mulf %313, %277 : vector<8x40xf32>
    %cst_115 = arith.constant 1.000000e+00 : f32
    %315 = vector.broadcast %cst_115 : f32 to vector<8x40xf32>
    %316 = arith.addf %315, %312 : vector<8x40xf32>
    %317 = arith.mulf %314, %316 : vector<8x40xf32>
    %c0_116 = arith.constant 0 : index
    %c0_117 = arith.constant 0 : index
    %318 = vector.load %arg10[%c0_116, %c0_117] : memref<8x24xf32, #tpu.memory_space<vmem>>, vector<8x24xf32>
    %319 = vector.broadcast %19 : vector<1x40xf32> to vector<8x40xf32>
    %320 = arith.mulf %317, %319 : vector<8x40xf32>
    %cst_118 = arith.constant 0.000000e+00 : f32
    %321 = vector.broadcast %cst_118 : f32 to vector<8x1xf32>
    %322 = tpu.concatenate %321, %320, %321 in 1 : vector<8x1xf32>, vector<8x40xf32>, vector<8x1xf32> -> vector<8x42xf32>
    %323 = vector.extract_strided_slice %322 {offsets = [0, 0], sizes = [8, 40], strides = [1, 1]} : vector<8x42xf32> to vector<8x40xf32>
    %324 = vector.extract_strided_slice %322 {offsets = [0, 1], sizes = [8, 40], strides = [1, 1]} : vector<8x42xf32> to vector<8x40xf32>
    %325 = vector.extract_strided_slice %322 {offsets = [0, 2], sizes = [8, 40], strides = [1, 1]} : vector<8x42xf32> to vector<8x40xf32>
    %326 = tpu.concatenate %323, %324, %325 in 0 : vector<8x40xf32>, vector<8x40xf32>, vector<8x40xf32> -> vector<24x40xf32>
    %cst_119 = arith.constant dense<0.000000e+00> : vector<8x40xf32>
    %327 = tpu.matmul %318, %326, %cst_119 {dimension_numbers = #tpu.dot_dimension_numbers<[1], [0], [0], [1], [0, 0, 1, 1], [], []>} : vector<8x24xf32>, vector<24x40xf32>, vector<8x40xf32> -> vector<8x40xf32>
    %328 = tpu.iota {dimensions = array<i32: 0>} : vector<20x8xi32>
    %329 = tpu.iota {dimensions = array<i32: 1>} : vector<20x8xi32>
    %c2_i32_120 = arith.constant 2 : i32
    %330 = vector.broadcast %c2_i32_120 : i32 to vector<20x8xi32>
    %331 = arith.muli %330, %329 : vector<20x8xi32>
    %c2_i32_121 = arith.constant 2 : i32
    %332 = vector.broadcast %c2_i32_121 : i32 to vector<20x8xi32>
    %333 = arith.addi %332, %331 : vector<20x8xi32>
    %334 = arith.cmpi eq, %328, %333 : vector<20x8xi32>
    %cst_122 = arith.constant 1.000000e+00 : f32
    %cst_123 = arith.constant 0.000000e+00 : f32
    %335 = vector.broadcast %cst_122 : f32 to vector<20x8xf32>
    %336 = vector.broadcast %cst_123 : f32 to vector<20x8xf32>
    %337 = arith.select %334, %335, %336 : vector<20x8xi1>, vector<20x8xf32>
    %338 = vector.extract_strided_slice %327 {offsets = [0, 0], sizes = [8, 20], strides = [1, 1]} : vector<8x40xf32> to vector<8x20xf32>
    %cst_124 = arith.constant dense<0.000000e+00> : vector<8x8xf32>
    %339 = tpu.matmul %338, %337, %cst_124 {dimension_numbers = #tpu.dot_dimension_numbers<[1], [0], [0], [1], [0, 0, 1, 1], [], []>} : vector<8x20xf32>, vector<20x8xf32>, vector<8x8xf32> -> vector<8x8xf32>
    %c0_125 = arith.constant 0 : index
    %c0_126 = arith.constant 0 : index
    %c0_127 = arith.constant 0 : index
    %c0_128 = arith.constant 0 : index
    %340 = vector.load %arg11[%c0_125, %c0_126, %c0_127, %c0_128] : memref<1x2x8x8xf32, #tpu.memory_space<vmem>>, vector<1x1x8x8xf32>
    %341 = vector.shape_cast %340 : vector<1x1x8x8xf32> to vector<8x8xf32>
    %342 = vector.shape_cast %339 : vector<8x8xf32> to vector<1x1x8x8xf32>
    tpu.vector_store %arg11[%c0_125, %c0_126, %c0_127, %c0_128], %342 {strides = array<i32>} : memref<1x2x8x8xf32, #tpu.memory_space<vmem>>, vector<1x1x8x8xf32>,
    %343 = vector.extract_strided_slice %327 {offsets = [0, 20], sizes = [8, 20], strides = [1, 1]} : vector<8x40xf32> to vector<8x20xf32>
    %cst_129 = arith.constant dense<0.000000e+00> : vector<8x8xf32>
    %344 = tpu.matmul %343, %337, %cst_129 {dimension_numbers = #tpu.dot_dimension_numbers<[1], [0], [0], [1], [0, 0, 1, 1], [], []>} : vector<8x20xf32>, vector<20x8xf32>, vector<8x8xf32> -> vector<8x8xf32>
    %c0_130 = arith.constant 0 : index
    %c1 = arith.constant 1 : index
    %c0_131 = arith.constant 0 : index
    %c0_132 = arith.constant 0 : index
    %345 = vector.load %arg11[%c0_130, %c1, %c0_131, %c0_132] : memref<1x2x8x8xf32, #tpu.memory_space<vmem>>, vector<1x1x8x8xf32>
    %346 = vector.shape_cast %345 : vector<1x1x8x8xf32> to vector<8x8xf32>
    %347 = vector.shape_cast %344 : vector<8x8xf32> to vector<1x1x8x8xf32>
    tpu.vector_store %arg11[%c0_130, %c1, %c0_131, %c0_132], %347 {strides = array<i32>} : memref<1x2x8x8xf32, #tpu.memory_space<vmem>>, vector<1x1x8x8xf32>,
    return
  }
  func.func @transform_0(%arg0: i32) -> (i32, i32, i32) {
    %c0_i32 = arith.constant 0 : i32
    %c0_i32_0 = arith.constant 0 : i32
    %c0_i32_1 = arith.constant 0 : i32
    return %arg0, %c0_i32, %c0_i32_0 : i32, i32, i32
  }
  func.func @transform_1(%arg0: i32) -> (i32, i32) {
    %c0_i32 = arith.constant 0 : i32
    %c0_i32_0 = arith.constant 0 : i32
    %c0_i32_1 = arith.constant 0 : i32
    return %c0_i32, %c0_i32_0 : i32, i32
  }
  func.func @transform_2(%arg0: i32) -> (i32, i32) {
    %c0_i32 = arith.constant 0 : i32
    %c0_i32_0 = arith.constant 0 : i32
    %c0_i32_1 = arith.constant 0 : i32
    return %c0_i32, %c0_i32_0 : i32, i32
  }
  func.func @transform_3(%arg0: i32) -> (i32, i32) {
    %c0_i32 = arith.constant 0 : i32
    %c0_i32_0 = arith.constant 0 : i32
    %c0_i32_1 = arith.constant 0 : i32
    return %c0_i32, %c0_i32_0 : i32, i32
  }
  func.func @transform_4(%arg0: i32) -> (i32, i32) {
    %c0_i32 = arith.constant 0 : i32
    %c0_i32_0 = arith.constant 0 : i32
    %c0_i32_1 = arith.constant 0 : i32
    return %c0_i32, %c0_i32_0 : i32, i32
  }
  func.func @transform_5(%arg0: i32) -> (i32, i32) {
    %c0_i32 = arith.constant 0 : i32
    %c0_i32_0 = arith.constant 0 : i32
    %c0_i32_1 = arith.constant 0 : i32
    return %c0_i32, %c0_i32_0 : i32, i32
  }
  func.func @transform_6(%arg0: i32) -> (i32, i32) {
    %c0_i32 = arith.constant 0 : i32
    %c0_i32_0 = arith.constant 0 : i32
    %c0_i32_1 = arith.constant 0 : i32
    return %c0_i32, %c0_i32_0 : i32, i32
  }
  func.func @transform_7(%arg0: i32) -> (i32, i32) {
    %c0_i32 = arith.constant 0 : i32
    %c0_i32_0 = arith.constant 0 : i32
    %c0_i32_1 = arith.constant 0 : i32
    return %c0_i32, %c0_i32_0 : i32, i32
  }
  func.func @transform_8(%arg0: i32) -> (i32, i32) {
    %c0_i32 = arith.constant 0 : i32
    %c0_i32_0 = arith.constant 0 : i32
    %c0_i32_1 = arith.constant 0 : i32
    return %c0_i32, %c0_i32_0 : i32, i32
  }
  func.func @transform_9(%arg0: i32) -> (i32, i32) {
    %c0_i32 = arith.constant 0 : i32
    %c0_i32_0 = arith.constant 0 : i32
    %c0_i32_1 = arith.constant 0 : i32
    return %c0_i32, %c0_i32_0 : i32, i32
  }
  func.func @transform_10(%arg0: i32) -> (i32, i32, i32, i32) {
    %c0_i32 = arith.constant 0 : i32
    %c0_i32_0 = arith.constant 0 : i32
    %c0_i32_1 = arith.constant 0 : i32
    %c0_i32_2 = arith.constant 0 : i32
    return %arg0, %c0_i32, %c0_i32_0, %c0_i32_1 : i32, i32, i32, i32
  }
}

</mosaic_0001>

<bundles_post_ra>
// kernel: down_forward.1
= control target key start
LH: loop header
LB: loop body
LE: loop exit
PB: predicated region body
PF: predicated region fallthrough
CT: control target
= control target key end

     0   :  { %v36_v0 = vlaneseq  ;;  %s2268_s0 = inlined_call_operand.vmem [shape: f32[1,4,40], index: 0, kind: input, shape index: {}]   ;;  %s2269_s1 = inlined_call_operand.vmem [shape: f32[8,20], index: 1, kind: input, shape index: {}]   ;;  %s2270_s2 = inlined_call_operand.vmem [shape: f32[8,1], index: 2, kind: input, shape index: {}]   ;;  %s2271_s3 = inlined_call_operand.vmem [shape: f32[8,1], index: 3, kind: input, shape index: {}]   ;;  %s2272_s4 = inlined_call_operand.vmem [shape: f32[8,40], index: 4, kind: input, shape index: {}]   ;;  %s2273_s5 = inlined_call_operand.vmem [shape: f32[8,40], index: 5, kind: input, shape index: {}]   ;;  %s2274_s6 = inlined_call_operand.vmem [shape: f32[8,1], index: 6, kind: input, shape index: {}]   ;;  %s2275_s7 = inlined_call_operand.vmem [shape: f32[8,1], index: 7, kind: input, shape index: {}]   ;;  %s2276_s8 = inlined_call_operand.vmem [shape: f32[8,40], index: 8, kind: input, shape index: {}]   ;;  %s2277_s9 = inlined_call_operand.vmem [shape: f32[8,24], index: 9, kind: input, shape index: {}]   ;;  %s2278_s10 = inlined_call_operand.hbm [shape: f32[1,2,8,8], index: 10, kind: output, shape index: {}]  }
   0x1   :  { %15 = vsyncpa [#allocation3], 0  ;;  %v1908_v2 = vmov 0.0   ;;  %v84_v5 = vld [vmem:[%s2268_s0] sm:$0xf]  ;;  %s1909_s15 = smov 2  }
   0x2   :  { %v1981_v1 = vand.u32 127, %v36_v0  ;;  %v1910_v8 = vmov 0.0|0.0   ;;  %vm91_vm6 = vcmask 15360   ;;  %vm93_vm7 = vcmask 343040   ;;  %s1912_s0 = smov 126   ;;  %s1913_s16 = smov 127  }
   0x3   :  { %1786 = vmatprep.subr.bf16.mxu0 %v1910_v8  ;;  %1789 = vmatprep.subr.bf16.mxu1 %v1910_v8  ;;  %vm1911_vm8 = vmmov 0   ;;  %s1914_s17 = smov 125   ;;  %s1915_s18 = smov 124   ;;  %vm108_vm9 = vcmask 1043456   ;;  %v85_v19 = vld [vmem:[%s2269_s1] sm:$0xff]  ;;  %vm111_vm10 = vcmask 162816  }
   0x4   :  { %vm38_vm0 = vcmp.ge.s32.totalorder %v1981_v1, 2  ;;  %vm39_vm1 = vcmp.lt.s32.totalorder %v1981_v1, 18  ;;  %vm43_vm2 = vcmp.ge.s32.totalorder %v1981_v1, 22  ;;  %vm44_vm3 = vcmp.lt.s32.totalorder %v1981_v1, 38  ;;  %1645 = vmatprep.mubr.msk.f32.mxu0 %vm1911_vm8, %v1908_v2  ;;  %1658 = vmatprep.mubr.msk.f32.mxu1 %vm1911_vm8, %v1908_v2  ;;  %v187_v56 = vld [vmem:[%s2270_s2] sm:$0xff]  ;;  %s1923_s30 = smov [#allocation2]  }
   0x5   :  { %vm40_vm4 = vmand %vm38_vm0, %vm39_vm1  ;;  %v2019_v21 = vshrl.u32 %v36_v0, 7  ;;  %v60_v22 = vadd.s32 1, %v1981_v1  ;;  %v54_v24 = vmul.u32 20, %v1981_v1  ;;  %v1916_v29 = vmov 1.0|1.0   ;;  %v188_v57 = vld [vmem:[%s2271_s3] sm:$0xff] }
   0x6   :  { %v41_v3 = vsel %vm40_vm4, 1.0, %v1908_v2  ;;  %vm45_vm5 = vmand %vm43_vm2, %vm44_vm3  ;;  %v1917_v33 = vmov 1.0   ;;  %v1918_v58 = vmov 0   ;;  %s1512_s11 = sshll.u32 %s1923_s30, 4  ;;  %s1513_s11 = int_to_ptr.vmem [resolvable:$true] %s1512_s11 }
   0x7   :  { %v46_v4 = vsel %vm45_vm5, 1.0, %v1908_v2  ;;  %v2023_v23 = vadd.s32 8, %v2019_v21  ;;  %v61_v25 = vmul.u32 20, %v60_v22  ;;  %vm55_vm11 = vcmp.ge.s32.totalorder %v2019_v21, %v54_v24  ;;  %1862 = vset.pattern.permute.xlu1 %v1918_v58  ;;  %1863 = vset.pattern.permute.xlu0 %v1918_v58  ;;  %s1884_s12 = scalar_lea.vmem %s1513_s11, 256  ;;  %p1889_p1 = scmp.lt.s32.totalorder %s1513_s11, %s1513_s11 }
   0x8   :  { %v1992_v6 = vadd.f32 %v46_v4, %v41_v3  ;;  %v2031_v26 = vadd.s32 16, %v2019_v21  ;;  %v52_v27 = vadd.s32 24, %v2019_v21  ;;  %v53_v31 = vadd.s32 32, %v2019_v21  ;;  %p1885_p0 = scmp.ne.s32.totalorder %s1513_s11, %s1884_s12  ;;  %p1890_p2 = scmp.lt.s32.totalorder %s1884_s12, %s1884_s12 }
   0x9   :  { %vm56_vm12 = vcmp.ge.s32.totalorder %v2023_v23, %v54_v24  ;;  %vm62_vm13 = vcmp.lt.s32.totalorder %v2019_v21, %v61_v25  ;;  %vm63_vm14 = vcmp.lt.s32.totalorder %v2023_v23, %v61_v25  ;;  %v79_v52 = vadd.s32 1, %v2019_v21 }
   0xa   :  { %v86_v7 = vmul.f32 %v84_v5, %v1992_v6  ;;  %vm67_vm15 = vmand %vm55_vm11, %vm62_vm13  ;;  %vm57_vm2 = vcmp.ge.s32.totalorder %v2031_v26, %v54_v24  ;;  %vm58_vm3 = vcmp.ge.s32.totalorder %v52_v27, %v54_v24  ;;  %vm64_vm4 = vcmp.lt.s32.totalorder %v2031_v26, %v61_v25  ;;  %p1891_p3 = por %p1890_p2, %p1889_p1 }
   0xb   :  { %vm68_vm0 = vmand %vm56_vm12, %vm63_vm14  ;;  %vm65_vm5 = vcmp.lt.s32.totalorder %v52_v27, %v61_v25  ;;  %vm59_vm14 = vcmp.ge.s32.totalorder %v53_v31, %v54_v24  ;;  %v77_v53 = vmul.u32 20, %v2019_v21  ;;  %v80_v54 = vmul.u32 20, %v79_v52 }
   0xc   :  { %88 = vrot.lane.b32.xlu0 %v86_v7, %s1909_s15  ;;  %vm2034_vm1 = vmpackc.low %vm68_vm0, %vm67_vm15  ;;  %vm66_vm15 = vcmp.lt.s32.totalorder %v53_v31, %v61_v25  ;;  %p1892_p4 = pnand %p1891_p3, %p1885_p0 }
   0xd   :  { %1791 = vmatpush3.bf16.msk.msra.mxu1 %vm2034_vm1, %v1916_v29  ;;  %vm69_vm11 = vmand %vm57_vm2, %vm64_vm4  ;;  %vm190_vm2 = vcmask 326656   ;;  %vm81_vm4 = vcmp.lt.s32.totalorder %v1981_v1, %v80_v54 }
   0xe   :  { %1792 = vmatprep.subr.bf16.mxu1 %v1910_v8  ;;  %vm70_vm12 = vmand %vm58_vm3, %vm65_vm5  ;;  %vm78_vm3 = vcmp.ge.s32.totalorder %v1981_v1, %v77_v53 }
   0xf   :  { %vm2048_vm13 = vmpackc.low %vm70_vm12, %vm69_vm11  ;;  %vm361_vm11 = vcmask 1041408  }
  0x10   :  { %vm2061_vm0 = vmand %vm59_vm14, %vm66_vm15  ;;  %vm1920_vm14 = vmmov 1  }
  0x11   :  { %1794 = vmatpush3.bf16.msk.msra.mxu1 %vm2048_vm13, %v1916_v29  ;;  %vm82_vm5 = vmand %vm78_vm3, %vm81_vm4 }
  0x12   :  { %1656 = vmatprep.subr.mxu1 %v1908_v2  ;;  %v2087_v55 = vsel %vm82_vm5, 1.0, %v1908_v2  ;;  %vm2123_vm15 = vmpackc.low %vm1920_vm14, %vm93_vm7 }
  0x15   :  { %1657 = vmatpush3.msk.msra.mxu1 %vm2061_vm0, %v1917_v33 }
  0x16   :  { %1674 = vmatprep.subr.mxu1 %v1908_v2 }
  0x7e   :  { %v89_v9 = vpop.permute.xlu0 %88 }
  0x7f   :  { %v92_v10 = vsel %vm91_vm6, 0.0, %v89_v9  ;;  %v2108_v9 = vsub.s32 0, %v2019_v21 }
  0x80   :  { %v94_v11 = vsel %vm93_vm7, %v92_v10, 0.0 }
  0x81   :  { %100 = vrot.lane.b32.xlu1 %v94_v11, %s1912_s0  ;;  %v96_v12 = vrot.slane %v94_v11, 4 }
  0x83   :  { %97 = vrot.lane.b32.xlu0 %v96_v12, %s1913_s16 }
  0x85   :  { %103 = vrot.lane.b32.xlu1 %v96_v12, %s1914_s17 }
  0x87   :  { %106 = vrot.lane.b32.xlu0 %v94_v11, %s1915_s18 }
  0x89   :  { %520 = vperm.xlu1 %1862, %v187_v56  }
  0x8b   :  { %526 = vperm.xlu0 %1863, %v188_v57  }
  0xf3   :  { %v101_v13 = vpop.permute.xlu1 %100 }
  0xf5   :  { %v98_v14 = vpop.permute.xlu0 %97 }
  0xf6   :  { %v109_v16 = vsel %vm108_vm9, %v94_v11, %v98_v14 }
  0xf7   :  { %v104_v15 = vpop.permute.xlu1 %103 }
  0xf8   :  { %v110_v17 = vsel %vm108_vm9, %v101_v13, %v104_v15 }
  0xf9   :  { %v1787_v18 = vpack.c.bf16 %v110_v17, %v109_v16  ;;  %v107_v20 = vpop.permute.xlu0 %106 }
  0xfb   :  { %1788 = vmatpush3.bf16.msra.mxu0 %v1787_v18 }
  0xfc   :  { %1643 = vmatprep.subr.mxu0 %v1908_v2 }
  0xff   :  { %1644 = vmatpush3.msk.msra.mxu0 %vm108_vm9, %v107_v20 }
 0x100   :  { %1646 = vmatmul.mubr.msk.f32.vlgmr.msra.gmra.mrb[0].mxu0 %vm111_vm10, %v85_v19  ;;  %1795 = vmatprep.subr.bf16.mxu0 %v1910_v8 }
 0x101   :  { %1671 = vmatprep.mubr.msk.f32.mxu0 %vm1911_vm8, %v1908_v2  ;;  %1797 = vmatpush3.bf16.msk.msra.mxu0 %vm2034_vm1, %v1916_v29 }
 0x102   :  { %1798 = vmatprep.subr.bf16.mxu0 %v1910_v8 }
 0x105   :  { %1800 = vmatpush3.bf16.msk.msra.mxu0 %vm2048_vm13, %v1916_v29 }
 0x106   :  { %1669 = vmatprep.subr.mxu0 %v1908_v2 }
 0x108   :  { %v521_v17 = vpop.permute.xlu1 %520 }
 0x109   :  { %1670 = vmatpush3.msk.msra.mxu0 %vm2061_vm0, %v1917_v33 }
 0x10a   :  { %1801 = vmatprep.subr.bf16.mxu0 %v1910_v8  ;;  %v527_v19 = vpop.permute.xlu0 %526 }
 0x1d3   :  { %v183_v34 = vpop.f32.mrb[0].mxu0 }
 0x1d4   :  { %v189_v35 = vmul.f32 %v183_v34, %v1992_v6  ;;  %v1647_v36 = vpop.f32.mrb[1].mxu0 }
 0x1d6   :  { %v191_v37 = vsel %vm190_vm2, %v189_v35, 0.0  ;;  %v271_v38 = vmul.f32 %v189_v35, %v189_v35 }
 0x1d7   :  { %v192_v39 = vrot.slane %v191_v37, 4 }
 0x1d8   :  { %v272_v40 = vsel %vm190_vm2, %v271_v38, 0.0 }
 0x1d9   :  { %v193_v41 = vadd.f32 %v192_v39, %v191_v37  ;;  %v273_v42 = vrot.slane %v272_v40, 4 }
 0x1db   :  { %v194_v43 = vrot.slane %v193_v41, 2  ;;  %v274_v44 = vadd.f32 %v273_v42, %v272_v40 }
 0x1dd   :  { %v195_v45 = vadd.f32 %v194_v43, %v193_v41  ;;  %v275_v46 = vrot.slane %v274_v44, 2 }
 0x1df   :  { %v196_v47 = vrot.slane %v195_v45, 1  ;;  %v276_v48 = vadd.f32 %v275_v46, %v274_v44 }
 0x1e1   :  { %v277_v49 = vrot.slane %v276_v48, 1  ;;  %v197_v50 = vadd.f32 %v196_v47, %v195_v45 }
 0x1e3   :  { %v278_v51 = vadd.f32 %v277_v49, %v276_v48  ;;  %1659 = vmatmul.mubr.msk.f32.vlgmr.msra.gmra.mrb[0].mxu1 %vm190_vm2, %v197_v50  ;;  %v1919_v50 = vmov -1.0  }
 0x1e4   :  { %1676 = vmatprep.mubr.msk.f32.mxu1 %vm1911_vm8, %v1908_v2  ;;  %1675 = vmatpush3.msk.msra.mxu1 %vm361_vm11, %v2087_v55 }
 0x1e5   :  { %1672 = vmatmul.mubr.msk.f32.vlgmr.msra.gmra.mrb[2].mxu0 %vm190_vm2, %v278_v51  ;;  %1679 = vmatprep.subr.mxu1 %v1908_v2 }
 0x1e6   :  { %1694 = vmatprep.mubr.msk.f32.mxu0 %vm1911_vm8, %v1908_v2 }
 0x2b6   :  { %v267_v59 = vpop.f32.mrb[0].mxu1 }
 0x2b7   :  { %v352_v60 = vmul.f32 0.0078125, %v267_v59  ;;  %v1660_v61 = vpop.f32.mrb[1].mxu1 }
 0x2b8   :  { %v348_v62 = vpop.f32.mrb[2].mxu0 }
 0x2b9   :  { %v354_v63 = vmul.f32 %v352_v60, %v352_v60  ;;  %v353_v0 = vmul.f32 0.0078125, %v348_v62  ;;  %v1673_v3 = vpop.f32.mrb[3].mxu0  ;;  %1677 = vmatmul.mubr.msk.f32.vlgmr.msra.gmra.mrb[2].mxu1 %vm91_vm6, %v352_v60 }
 0x2ba   :  { %1680 = vmatpush3.msk.msra.mxu1 %vm361_vm11, %v2087_v55  ;;  %1681 = vmatprep.mubr.msk.f32.mxu1 %vm1911_vm8, %v1908_v2 }
 0x2bb   :  { %v355_v4 = vsub.f32 %v353_v0, %v354_v63  ;;  %1808 = vmatprep.subr.bf16.mxu1 %v1910_v8 }
 0x2bd   :  { %v356_v5 = vadd.f32 1e-05, %v355_v4 }
 0x2bf   :  { %1864 = vrsqrt.f32 %v356_v5  ;;  %v556_v5 = vld [vmem:[%s2272_s4] sm:$0xff] }
 0x2c9   :  { %v1865_v7 = vpop.eup %1864 }
 0x2ca   :  { %1682 = vmatmul.mubr.msk.f32.vlgmr.msra.gmra.mrb[4].mxu1 %vm91_vm6, %v1865_v7 }
 0x2cb   :  { %1707 = vmatprep.mubr.msk.f32.mxu1 %vm1911_vm8, %v1908_v2 }
 0x38c   :  { %v431_v10 = vpop.f32.mrb[2].mxu1 }
 0x38d   :  { %v511_v11 = vrot.slane %v431_v10, %v2108_v9  ;;  %v1678_v12 = vpop.f32.mrb[3].mxu1 }
 0x38f   :  { %v512_v13 = vsub.f32 %v183_v34, %v511_v11 }
 0x39d   :  { %v504_v14 = vpop.f32.mrb[4].mxu1 }
 0x39e   :  { %v516_v15 = vrot.slane %v504_v14, %v2108_v9  ;;  %v1683_v16 = vpop.f32.mrb[5].mxu1 }
 0x3a0   :  { %v517_v18 = vmul.f32 %v516_v15, %v512_v13 }
 0x3a2   :  { %v523_v20 = vmul.f32 %v521_v17, %v517_v18 }
 0x3a4   :  { %v529_v22 = vadd.f32 %v527_v19, %v523_v20 }
 0x3a6   :  { %v530_v24 = vmul.f32 0.70710677, %v529_v22  ;;  %v553_v53 = vmul.f32 0.5, %v529_v22 }
 0x3a8   :  { %v531_v25 = vand.u32 2147483647, %v530_v24  ;;  %vm532_vm12 = vcmp.ge.f32.partialorder %v530_v24, 0.0 }
 0x3a9   :  { %v533_v51 = vsel %vm532_vm12, 1.0, %v1919_v50 }
 0x3aa   :  { %v534_v27 = vmul.f32 0.3275911, %v531_v25  ;;  %v546_v35 = vsub.f32 0.0, %v531_v25 }
 0x3ac   :  { %v535_v31 = vadd.f32 1.0, %v534_v27  ;;  %v547_v37 = vmul.f32 %v546_v35, %v531_v25 }
 0x3ae   :  { %1866 = vrcp.f32 %v535_v31  ;;  %v548_v34 = vmul.f32 1.442695, %v547_v37 }
 0x3b0   :  { %1868 = vpow2.f32 %v548_v34 }
 0x3b8   :  { %v1867_v36 = vpop.eup %1866 }
 0x3b9   :  { %v537_v38 = vmul.f32 1.0614054, %v1867_v36 }
 0x3ba   :  { %v1869_v47 = vpop.eup %1868 }
 0x3bb   :  { %v538_v39 = vadd.f32 -1.4531521, %v537_v38 }
 0x3bd   :  { %v539_v40 = vmul.f32 %v1867_v36, %v538_v39 }
 0x3bf   :  { %v540_v41 = vadd.f32 1.4214138, %v539_v40 }
 0x3c1   :  { %v541_v42 = vmul.f32 %v1867_v36, %v540_v41 }
 0x3c3   :  { %v542_v43 = vadd.f32 -0.28449672, %v541_v42 }
 0x3c5   :  { %v543_v44 = vmul.f32 %v1867_v36, %v542_v43 }
 0x3c7   :  { %v544_v45 = vadd.f32 0.2548296, %v543_v44 }
 0x3c9   :  { %v545_v46 = vmul.f32 %v1867_v36, %v544_v45 }
 0x3cb   :  { %v550_v48 = vmul.f32 %v1869_v47, %v545_v46 }
 0x3cd   :  { %v551_v49 = vsub.f32 1.0, %v550_v48 }
 0x3cf   :  { %v552_v52 = vmul.f32 %v551_v49, %v533_v51  ;;  %v771_v49 = vld [vmem:[%s2275_s7] sm:$0xff] }
 0x3d0   :  { %v770_v51 = vld [vmem:[%s2274_s6] sm:$0xff] }
 0x3d1   :  { %v554_v54 = vadd.f32 1.0, %v552_v52 }
 0x3d3   :  { %v555_v56 = vmul.f32 %v554_v54, %v553_v53 }
 0x3d5   :  { %v557_v57 = vmul.f32 %v555_v56, %v1992_v6 }
 0x3d7   :  { %559 = vrot.lane.b32.xlu1 %v557_v57, %s1909_s15 }
 0x449   :  { %v560_v58 = vpop.permute.xlu1 %559 }
 0x44a   :  { %v562_v59 = vsel %vm91_vm6, 0.0, %v560_v58  ;;  %v676_v58 = vld [vmem:[%s2273_s5] sm:$0xff] }
 0x44b   :  { %v563_v60 = vsel %vm93_vm7, %v562_v59, 0.0 }
 0x44c   :  { %568 = vrot.lane.b32.xlu0 %v563_v60, %s1912_s0  ;;  %565 = vrot.lane.b32.xlu1 %v563_v60, %s1913_s16 }
 0x450   :  { %574 = vrot.lane.b32.xlu0 %v563_v60, %s1915_s18  ;;  %571 = vrot.lane.b32.xlu1 %v563_v60, %s1914_s17 }
 0x4be   :  { %v566_v61 = vpop.permute.xlu1 %565  ;;  %v569_v0 = vpop.permute.xlu0 %568 }
 0x4bf   :  { %v1802_v63 = vpack.c.bf16 %v566_v61, %v562_v59 }
 0x4c1   :  { %1804 = vmatpush3.bf16.msk.msra.mxu0 %vm2123_vm15, %v1802_v63 }
 0x4c2   :  { %v572_v3 = vpop.permute.xlu1 %571  ;;  %1805 = vmatprep.subr.bf16.mxu0 %v1910_v8  ;;  %v575_v7 = vpop.permute.xlu0 %574 }
 0x4c3   :  { %v1806_v4 = vpack.c.bf16 %v572_v3, %v569_v0 }
 0x4c5   :  { %1807 = vmatpush3.bf16.msra.mxu0 %v1806_v4 }
 0x4c6   :  { %1692 = vmatprep.subr.mxu0 %v1908_v2 }
 0x4c9   :  { %1693 = vmatpush3.msra.mxu0 %v575_v7 }
 0x4ca   :  { %1695 = vmatmul.mubr.msk.f32.vlgmr.msra.gmra.mrb[4].mxu0 %vm190_vm2, %v556_v5  ;;  %1815 = vmatprep.subr.bf16.mxu0 %v1910_v8 }
 0x4cb   :  { %1817 = vmatpush3.bf16.msk.msra.mxu0 %vm2034_vm1, %v1916_v29  ;;  %1720 = vmatprep.mubr.msk.f32.mxu0 %vm1911_vm8, %v1908_v2 }
 0x4cc   :  { %1818 = vmatprep.subr.bf16.mxu0 %v1910_v8 }
 0x4cf   :  { %1820 = vmatpush3.bf16.msk.msra.mxu0 %vm2048_vm13, %v1916_v29 }
 0x4d0   :  { %1718 = vmatprep.subr.mxu0 %v1908_v2 }
 0x4d3   :  { %1719 = vmatpush3.msk.msra.mxu0 %vm2061_vm0, %v1917_v33 }
 0x4d4   :  { %1736 = vmatprep.subr.mxu0 %v1908_v2 }
 0x59d   :  { %v646_v10 = vpop.f32.mrb[4].mxu0 }
 0x59e   :  { %v650_v11 = vmul.f32 0.70710677, %v646_v10  ;;  %v1696_v12 = vpop.f32.mrb[5].mxu0  ;;  %v673_v42 = vmul.f32 0.5, %v646_v10 }
 0x5a0   :  { %v651_v13 = vand.u32 2147483647, %v650_v11  ;;  %vm652_vm3 = vcmp.ge.f32.partialorder %v650_v11, 0.0 }
 0x5a1   :  { %v653_v40 = vsel %vm652_vm3, 1.0, %v1919_v50 }
 0x5a2   :  { %v654_v14 = vmul.f32 0.3275911, %v651_v13  ;;  %v666_v16 = vsub.f32 0.0, %v651_v13 }
 0x5a4   :  { %v655_v15 = vadd.f32 1.0, %v654_v14  ;;  %v667_v18 = vmul.f32 %v666_v16, %v651_v13 }
 0x5a6   :  { %1870 = vrcp.f32 %v655_v15  ;;  %v668_v22 = vmul.f32 1.442695, %v667_v18 }
 0x5a8   :  { %1872 = vpow2.f32 %v668_v22 }
 0x5b0   :  { %v1871_v17 = vpop.eup %1870 }
 0x5b1   :  { %v657_v19 = vmul.f32 1.0614054, %v1871_v17 }
 0x5b2   :  { %v1873_v38 = vpop.eup %1872 }
 0x5b3   :  { %v658_v20 = vadd.f32 -1.4531521, %v657_v19 }
 0x5b5   :  { %v659_v24 = vmul.f32 %v1871_v17, %v658_v20 }
 0x5b7   :  { %v660_v25 = vadd.f32 1.4214138, %v659_v24 }
 0x5b9   :  { %v661_v27 = vmul.f32 %v1871_v17, %v660_v25 }
 0x5bb   :  { %v662_v31 = vadd.f32 -0.28449672, %v661_v27 }
 0x5bd   :  { %v663_v35 = vmul.f32 %v1871_v17, %v662_v31 }
 0x5bf   :  { %v664_v36 = vadd.f32 0.2548296, %v663_v35 }
 0x5c1   :  { %v665_v37 = vmul.f32 %v1871_v17, %v664_v36 }
 0x5c3   :  { %v670_v39 = vmul.f32 %v1873_v38, %v665_v37 }
 0x5c5   :  { %v671_v34 = vsub.f32 1.0, %v670_v39 }
 0x5c7   :  { %v672_v41 = vmul.f32 %v671_v34, %v653_v40 }
 0x5c9   :  { %v674_v43 = vadd.f32 1.0, %v672_v41 }
 0x5cb   :  { %v675_v44 = vmul.f32 %v674_v43, %v673_v42 }
 0x5cd   :  { %v677_v45 = vmul.f32 %v675_v44, %v1992_v6 }
 0x5cf   :  { %679 = vrot.lane.b32.xlu1 %v677_v45, %s1909_s15 }
 0x641   :  { %v680_v46 = vpop.permute.xlu1 %679 }
 0x642   :  { %v682_v47 = vsel %vm91_vm6, 0.0, %v680_v46 }
 0x643   :  { %v683_v48 = vsel %vm93_vm7, %v682_v47, 0.0 }
 0x644   :  { %688 = vrot.lane.b32.xlu1 %v683_v48, %s1912_s0  ;;  %685 = vrot.lane.b32.xlu0 %v683_v48, %s1913_s16 }
 0x648   :  { %694 = vrot.lane.b32.xlu1 %v683_v48, %s1915_s18  ;;  %691 = vrot.lane.b32.xlu0 %v683_v48, %s1914_s17 }
 0x64c   :  { %1104 = vperm.xlu1 %1862, %v771_v49   ;;  %1098 = vperm.xlu0 %1863, %v770_v51  }
 0x6b6   :  { %v686_v52 = vpop.permute.xlu0 %685  ;;  %v689_v54 = vpop.permute.xlu1 %688 }
 0x6b7   :  { %v1809_v53 = vpack.c.bf16 %v686_v52, %v682_v47 }
 0x6b9   :  { %1811 = vmatpush3.bf16.msk.msra.mxu1 %vm2123_vm15, %v1809_v53 }
 0x6ba   :  { %v692_v56 = vpop.permute.xlu0 %691  ;;  %1812 = vmatprep.subr.bf16.mxu1 %v1910_v8  ;;  %v695_v59 = vpop.permute.xlu1 %694 }
 0x6bb   :  { %v1813_v57 = vpack.c.bf16 %v692_v56, %v689_v54 }
 0x6bd   :  { %1814 = vmatpush3.bf16.msra.mxu1 %v1813_v57 }
 0x6be   :  { %1705 = vmatprep.subr.mxu1 %v1908_v2 }
 0x6c1   :  { %1706 = vmatpush3.msra.mxu1 %v695_v59 }
 0x6c2   :  { %1708 = vmatmul.mubr.msk.f32.vlgmr.msra.gmra.mrb[6].mxu1 %vm190_vm2, %v676_v58  ;;  %1821 = vmatprep.subr.bf16.mxu1 %v1910_v8 }
 0x6c3   :  { %1823 = vmatpush3.bf16.msk.msra.mxu1 %vm2034_vm1, %v1916_v29  ;;  %1733 = vmatprep.mubr.msk.f32.mxu1 %vm1911_vm8, %v1908_v2 }
 0x6c4   :  { %1824 = vmatprep.subr.bf16.mxu1 %v1910_v8 }
 0x6c7   :  { %1826 = vmatpush3.bf16.msk.msra.mxu1 %vm2048_vm13, %v1916_v29  ;;  %vm1262_vm13 = vcmask 334848  }
 0x6c8   :  { %1731 = vmatprep.subr.mxu1 %v1908_v2  ;;  %vm1836_vm5 = vmpackc.low %vm1920_vm14, %vm1262_vm13 }
 0x6cb   :  { %1732 = vmatpush3.msk.msra.mxu1 %vm2061_vm0, %v1917_v33  ;;  %v1099_v41 = vpop.permute.xlu0 %1098  ;;  %v1105_v43 = vpop.permute.xlu1 %1104 }
 0x6cc   :  { %1741 = vmatprep.subr.mxu1 %v1908_v2 }
 0x795   :  { %v766_v60 = vpop.f32.mrb[6].mxu1 }
 0x796   :  { %v772_v28 = vmul.f32 %v766_v60, %v1992_v6  ;;  %v1709_v61 = vpop.f32.mrb[7].mxu1 }
 0x798   :  { %v773_v63 = vsel %vm190_vm2, %v772_v28, 0.0  ;;  %v853_v0 = vmul.f32 %v772_v28, %v772_v28 }
 0x799   :  { %v774_v3 = vrot.slane %v773_v63, 4 }
 0x79a   :  { %v854_v4 = vsel %vm190_vm2, %v853_v0, 0.0 }
 0x79b   :  { %v775_v30 = vadd.f32 %v774_v3, %v773_v63  ;;  %v855_v5 = vrot.slane %v854_v4, 4 }
 0x79d   :  { %v776_v7 = vrot.slane %v775_v30, 2  ;;  %v856_v10 = vadd.f32 %v855_v5, %v854_v4 }
 0x79f   :  { %v777_v11 = vadd.f32 %v776_v7, %v775_v30  ;;  %v857_v12 = vrot.slane %v856_v10, 2 }
 0x7a1   :  { %v778_v32 = vrot.slane %v777_v11, 1  ;;  %v858_v33 = vadd.f32 %v857_v12, %v856_v10 }
 0x7a3   :  { %v779_v13 = vadd.f32 %v778_v32, %v777_v11  ;;  %v859_v14 = vrot.slane %v858_v33, 1 }
 0x7a5   :  { %v860_v15 = vadd.f32 %v859_v14, %v858_v33  ;;  %1721 = vmatmul.mubr.msk.f32.vlgmr.msra.gmra.mrb[6].mxu0 %vm190_vm2, %v779_v13 }
 0x7a6   :  { %1737 = vmatpush3.msk.msra.mxu0 %vm361_vm11, %v2087_v55  ;;  %1738 = vmatprep.mubr.msk.f32.mxu0 %vm1911_vm8, %v1908_v2 }
 0x7a7   :  { %1734 = vmatmul.mubr.msk.f32.vlgmr.msra.gmra.mrb[8].mxu1 %vm190_vm2, %v860_v15  ;;  %1827 = vmatprep.subr.bf16.mxu0 %v1910_v8 }
 0x7a8   :  { %1742 = vmatpush3.msk.msra.mxu1 %vm361_vm11, %v2087_v55  ;;  %1743 = vmatprep.mubr.msk.f32.mxu1 %vm1911_vm8, %v1908_v2  ;;  %vm1271_vm11 = vcmask 195584  }
 0x7a9   :  { %1834 = vmatprep.subr.bf16.mxu1 %v1910_v8 }
 0x878   :  { %v849_v16 = vpop.f32.mrb[6].mxu0 }
 0x879   :  { %v934_v17 = vmul.f32 0.0078125, %v849_v16  ;;  %v1722_v18 = vpop.f32.mrb[7].mxu0 }
 0x87a   :  { %v930_v19 = vpop.f32.mrb[8].mxu1  ;;  %v1134_v18 = vld [vmem:[%s2276_s8] sm:$0xff]  ;;  %s1921_s8 = smov 1  }
 0x87b   :  { %v936_v20 = vmul.f32 %v934_v17, %v934_v17  ;;  %v935_v22 = vmul.f32 0.0078125, %v930_v19  ;;  %v1735_v24 = vpop.f32.mrb[9].mxu1  ;;  %1739 = vmatmul.mubr.msk.f32.vlgmr.msra.gmra.mrb[8].mxu0 %vm91_vm6, %v934_v17 }
 0x87c   :  { %1756 = vmatprep.mubr.msk.f32.mxu0 %vm1911_vm8, %v1908_v2 }
 0x87d   :  { %v937_v25 = vsub.f32 %v935_v22, %v936_v20 }
 0x87f   :  { %v938_v27 = vadd.f32 1e-05, %v937_v25 }
 0x881   :  { %1874 = vrsqrt.f32 %v938_v27 }
 0x88b   :  { %v1875_v55 = vpop.eup %1874 }
 0x88c   :  { %1744 = vmatmul.mubr.msk.f32.vlgmr.msra.gmra.mrb[10].mxu1 %vm91_vm6, %v1875_v55 }
 0x88d   :  { %1765 = vmatprep.mubr.msk.f32.mxu1 %vm1911_vm8, %v1908_v2 }
 0x94e   :  { %v1009_v31 = vpop.f32.mrb[8].mxu0 }
 0x94f   :  { %v1089_v35 = vrot.slane %v1009_v31, %v2108_v9  ;;  %v1740_v36 = vpop.f32.mrb[9].mxu0 }
 0x951   :  { %v1090_v37 = vsub.f32 %v766_v60, %v1089_v35 }
 0x95f   :  { %v1082_v38 = vpop.f32.mrb[10].mxu1 }
 0x960   :  { %v1094_v39 = vrot.slane %v1082_v38, %v2108_v9  ;;  %v1745_v34 = vpop.f32.mrb[11].mxu1 }
 0x962   :  { %v1095_v40 = vmul.f32 %v1094_v39, %v1090_v37 }
 0x964   :  { %v1101_v42 = vmul.f32 %v1099_v41, %v1095_v40 }
 0x966   :  { %v1107_v44 = vadd.f32 %v1105_v43, %v1101_v42 }
 0x968   :  { %v1108_v45 = vmul.f32 0.70710677, %v1107_v44  ;;  %v1131_v5 = vmul.f32 0.5, %v1107_v44 }
 0x96a   :  { %v1109_v46 = vand.u32 2147483647, %v1108_v45  ;;  %vm1110_vm1 = vcmp.ge.f32.partialorder %v1108_v45, 0.0 }
 0x96b   :  { %v1111_v4 = vsel %vm1110_vm1, 1.0, %v1919_v50 }
 0x96c   :  { %v1112_v47 = vmul.f32 0.3275911, %v1109_v46  ;;  %v1124_v49 = vsub.f32 0.0, %v1109_v46 }
 0x96e   :  { %v1113_v48 = vadd.f32 1.0, %v1112_v47  ;;  %v1125_v52 = vmul.f32 %v1124_v49, %v1109_v46 }
 0x970   :  { %1876 = vrcp.f32 %v1113_v48  ;;  %v1126_v56 = vmul.f32 1.442695, %v1125_v52 }
 0x972   :  { %1878 = vpow2.f32 %v1126_v56  ;;  %v1345_v56 = vmul.u32 2, %v1981_v1 }
 0x97a   :  { %v1877_v51 = vpop.eup %1876 }
 0x97b   :  { %v1115_v53 = vmul.f32 1.0614054, %v1877_v51 }
 0x97c   :  { %v1879_v63 = vpop.eup %1878 }
 0x97d   :  { %v1116_v54 = vadd.f32 -1.4531521, %v1115_v53 }
 0x97f   :  { %v1117_v57 = vmul.f32 %v1877_v51, %v1116_v54 }
 0x981   :  { %v1118_v58 = vadd.f32 1.4214138, %v1117_v57  ;;  %v1346_v57 = vadd.s32 2, %v1345_v56 }
 0x983   :  { %v1119_v9 = vmul.f32 %v1877_v51, %v1118_v58  ;;  %vm1347_vm0 = vcmp.eq.s32.totalorder %v2019_v21, %v1346_v57  ;;  %v1254_v21 = vld [vmem:[%s2277_s9] sm:$0xff]  ;;  %vm1349_vm12 = vcmp.eq.s32.totalorder %v2031_v26, %v1346_v57  ;;  %s1922_s9 = smov 108  }
 0x985   :  { %v1120_v59 = vadd.f32 -0.28449672, %v1119_v9 }
 0x987   :  { %v1121_v60 = vmul.f32 %v1877_v51, %v1120_v59  ;;  %v1352_v59 = vsel %vm1349_vm12, 1.0, %v1908_v2 }
 0x989   :  { %v1122_v28 = vadd.f32 0.2548296, %v1121_v60 }
 0x98b   :  { %v1123_v61 = vmul.f32 %v1877_v51, %v1122_v28 }
 0x98d   :  { %v1128_v0 = vmul.f32 %v1879_v63, %v1123_v61 }
 0x98f   :  { %v1129_v3 = vsub.f32 1.0, %v1128_v0 }
 0x991   :  { %v1130_v30 = vmul.f32 %v1129_v3, %v1111_v4 }
 0x993   :  { %v1132_v7 = vadd.f32 1.0, %v1130_v30 }
 0x995   :  { %v1133_v10 = vmul.f32 %v1132_v7, %v1131_v5 }
 0x997   :  { %v1135_v11 = vmul.f32 %v1133_v10, %v1992_v6 }
 0x999   :  { %1137 = vrot.lane.b32.xlu0 %v1135_v11, %s1909_s15 }
 0xa0b   :  { %v1138_v12 = vpop.permute.xlu0 %1137 }
 0xa0c   :  { %v1140_v32 = vsel %vm91_vm6, 0.0, %v1138_v12 }
 0xa0d   :  { %v1141_v33 = vsel %vm93_vm7, %v1140_v32, 0.0  ;;  %vm1260_vm7 = vcmask 7168  }
 0xa0e   :  { %1146 = vrot.lane.b32.xlu0 %v1141_v33, %s1912_s0  ;;  %1143 = vrot.lane.b32.xlu1 %v1141_v33, %s1913_s16 }
 0xa12   :  { %1152 = vrot.lane.b32.xlu0 %v1141_v33, %s1915_s18  ;;  %1149 = vrot.lane.b32.xlu1 %v1141_v33, %s1914_s17 }
 0xa80   :  { %v1144_v13 = vpop.permute.xlu1 %1143  ;;  %v1147_v15 = vpop.permute.xlu0 %1146 }
 0xa81   :  { %v1828_v14 = vpack.c.bf16 %v1144_v13, %v1140_v32 }
 0xa83   :  { %1830 = vmatpush3.bf16.msk.msra.mxu0 %vm2123_vm15, %v1828_v14 }
 0xa84   :  { %v1150_v16 = vpop.permute.xlu1 %1149  ;;  %1831 = vmatprep.subr.bf16.mxu0 %v1910_v8  ;;  %v1153_v19 = vpop.permute.xlu0 %1152 }
 0xa85   :  { %v1832_v17 = vpack.c.bf16 %v1150_v16, %v1147_v15 }
 0xa87   :  { %1833 = vmatpush3.bf16.msra.mxu0 %v1832_v17 }
 0xa88   :  { %1754 = vmatprep.subr.mxu0 %v1908_v2 }
 0xa8b   :  { %1755 = vmatpush3.msra.mxu0 %v1153_v19 }
 0xa8c   :  { %1757 = vmatmul.mubr.msk.f32.vlgmr.msra.gmra.mrb[10].mxu0 %vm190_vm2, %v1134_v18  ;;  %1841 = vmatprep.subr.bf16.mxu0 %v1910_v8  ;;  %vm1348_vm2 = vcmp.eq.s32.totalorder %v2023_v23, %v1346_v57 }
 0xa8d   :  { %1783 = vmatprep.mubr.msk.f32.mxu0 %vm1911_vm8, %v1908_v2  ;;  %vm1839_vm4 = vmpackc.low %vm1348_vm2, %vm1347_vm0 }
 0xa8e   :  { %1843 = vmatpush3.bf16.msk.msra.mxu0 %vm1839_vm4, %v1916_v29 }
 0xa8f   :  { %1781 = vmatprep.subr.mxu0 %v1908_v2 }
 0xa92   :  { %1782 = vmatpush3.msk.msra.mxu0 %vm108_vm9, %v1352_v59 }
 0xb5f   :  { %v1224_v62 = vpop.f32.mrb[10].mxu0 }
 0xb60   :  { %v1228_v20 = vmul.f32 0.70710677, %v1224_v62  ;;  %v1758_v22 = vpop.f32.mrb[11].mxu0  ;;  %v1251_v51 = vmul.f32 0.5, %v1224_v62 }
 0xb62   :  { %v1229_v24 = vand.u32 2147483647, %v1228_v20  ;;  %vm1230_vm6 = vcmp.ge.f32.partialorder %v1228_v20, 0.0 }
 0xb63   :  { %v1231_v48 = vsel %vm1230_vm6, 1.0, %v1919_v50 }
 0xb64   :  { %v1232_v25 = vmul.f32 0.3275911, %v1229_v24  ;;  %v1244_v55 = vsub.f32 0.0, %v1229_v24 }
 0xb66   :  { %v1233_v27 = vadd.f32 1.0, %v1232_v25  ;;  %v1245_v35 = vmul.f32 %v1244_v55, %v1229_v24 }
 0xb68   :  { %1880 = vrcp.f32 %v1233_v27  ;;  %v1246_v38 = vmul.f32 1.442695, %v1245_v35 }
 0xb6a   :  { %1882 = vpow2.f32 %v1246_v38 }
 0xb72   :  { %v1881_v31 = vpop.eup %1880 }
 0xb73   :  { %v1235_v36 = vmul.f32 1.0614054, %v1881_v31 }
 0xb74   :  { %v1883_v45 = vpop.eup %1882 }
 0xb75   :  { %v1236_v37 = vadd.f32 -1.4531521, %v1235_v36 }
 0xb77   :  { %v1237_v39 = vmul.f32 %v1881_v31, %v1236_v37 }
 0xb79   :  { %v1238_v34 = vadd.f32 1.4214138, %v1237_v39 }
 0xb7b   :  { %v1239_v40 = vmul.f32 %v1881_v31, %v1238_v34 }
 0xb7d   :  { %v1240_v41 = vadd.f32 -0.28449672, %v1239_v40 }
 0xb7f   :  { %v1241_v42 = vmul.f32 %v1881_v31, %v1240_v41 }
 0xb81   :  { %v1242_v43 = vadd.f32 0.2548296, %v1241_v42 }
 0xb83   :  { %v1243_v44 = vmul.f32 %v1881_v31, %v1242_v43 }
 0xb85   :  { %v1248_v46 = vmul.f32 %v1883_v45, %v1243_v44 }
 0xb87   :  { %v1249_v47 = vsub.f32 1.0, %v1248_v46 }
 0xb89   :  { %v1250_v49 = vmul.f32 %v1249_v47, %v1231_v48 }
 0xb8b   :  { %v1252_v52 = vadd.f32 1.0, %v1250_v49 }
 0xb8d   :  { %v1253_v53 = vmul.f32 %v1252_v52, %v1251_v51 }
 0xb8f   :  { %v1255_v54 = vmul.f32 %v1253_v53, %v1992_v6 }
 0xb91   :  { %1257 = vrot.lane.b32.xlu1 %v1255_v54, %s1921_s8 }
 0xc03   :  { %v1258_v58 = vpop.permute.xlu1 %1257 }
 0xc04   :  { %v1261_v9 = vsel %vm1260_vm7, 0.0, %v1258_v58 }
 0xc05   :  { %v1263_v50 = vsel %vm1262_vm13, %v1261_v9, 0.0 }
 0xc06   :  { %1268 = vrot.lane.b32.xlu1 %v1263_v50, %s1912_s0  ;;  %1265 = vrot.lane.b32.xlu0 %v1263_v50, %s1913_s16 }
 0xc78   :  { %v1266_v1 = vpop.permute.xlu0 %1265  ;;  %v1269_v23 = vpop.permute.xlu1 %1268 }
 0xc79   :  { %v1835_v6 = vpack.c.bf16 %v1266_v1, %v1261_v9 }
 0xc7b   :  { %1837 = vmatpush3.bf16.msk.msra.mxu1 %vm1836_vm5, %v1835_v6 }
 0xc7c   :  { %1763 = vmatprep.subr.mxu1 %v1908_v2 }
 0xc7f   :  { %1764 = vmatpush3.msra.mxu1 %v1269_v23 }
 0xc80   :  { %1766 = vmatmul.mubr.msk.f32.vlgmr.msra.gmra.mrb[12].mxu1 %vm1271_vm11, %v1254_v21  ;;  %1838 = vmatprep.subr.bf16.mxu1 %v1910_v8 }
 0xc81   :  { %1840 = vmatpush3.bf16.msk.msra.mxu1 %vm1839_vm4, %v1916_v29  ;;  %1774 = vmatprep.mubr.msk.f32.mxu1 %vm1911_vm8, %v1908_v2  ;;  %vm1429_vm8 = vcmask 64512  }
 0xc82   :  { %1772 = vmatprep.subr.mxu1 %v1908_v2 }
 0xc85   :  { %1773 = vmatpush3.msk.msra.mxu1 %vm108_vm9, %v1352_v59 }
 0xd53   :  { %v1341_v60 = vpop.f32.mrb[12].mxu1 }
 0xd54   :  { %1431 = vrot.lane.b32.xlu0 %v1341_v60, %s1922_s9  ;;  %v1767_v28 = vpop.f32.mrb[13].mxu1  ;;  %1775 = vmatmul.mubr.msk.f32.vlgmr.msra.gmra.mrb[14].mxu1 %vm111_vm10, %v1341_v60 }
 0xdc6   :  { %v1432_v8 = vpop.permute.xlu0 %1431 }
 0xdc7   :  { %1784 = vmatmul.mubr.msk.f32.vlgmr.msra.gmra.mrb[12].mxu0 %vm111_vm10, %v1432_v8 }
 0xe27   :  { %v1425_v29 = vpop.f32.mrb[14].mxu1 }
 0xe28   :  { %1430 = vst.msk [vmem:[#allocation2] sm:$0xff] %vm1429_vm8, %v1425_v29  ;;  %v1776_v61 = vpop.f32.mrb[15].mxu1 }
 0xe9a   :  { %v1501_v2 = vpop.f32.mrb[12].mxu0 }
 0xe9b   :  { %1506 = vst.msk [vmem:[#allocation2 + $0x8] sm:$0xff] %vm1429_vm8, %v1501_v2  ;;  %v1785_v26 = vpop.f32.mrb[13].mxu0 }
 0xe9c   :  { %1895 = shalt.err (!%p1892_p4)
}
 0xe9d   :  { %s1896_s15 = scalar_lea.hbm %s2278_s10, 256 }
 0xe9e   :  { %p1897_p5 = scmp.ne.s32.totalorder %s2278_s10, %s1896_s15  ;;  %p1900_p6 = scmp.lt.u32.totalorder %s1896_s15, %s2278_s10 }
 0xea0   :  { %p1902_p7 = pnand %p1900_p6, %p1897_p5 }
 0xea2   :  { %1905 = shalt.err (!%p1902_p7)
}
 0xea3   :  { %s1924_s19 = smov 128   ;;  %s1925_s20 = smov 8  }
 0xea4   :  { %1518 = dma.vmem_to_hbm [thread:$0]  %s1513_s11, 256, %s2278_s10, [#allocation3], %s1924_s19, %s1924_s19, %s1925_s20  }
 0xea5   :  { %1906 = dma.done.wait [#allocation3], 256  }
 0xea6   :  { %1907 = vsyncadd [#allocation3], 4294967040 }
 0xea7   :  { %1522 = vsyncpa [#allocation3], 1 }

</bundles_post_ra>
